<compile_context>
chip_gen: v7x
topology: tpu7x:2x2x1
jax: 0.10.0
libtpu: 0.0.40
codegen_flags: <defaults>
</compile_context>

<pallas_src>
import functools

import jax
import jax.numpy as jnp
from jax.experimental import pallas as pl
from jax.experimental.pallas import tpu as pltpu


_VMEM_LIMIT = 32 * 1024 * 1024   # safe scoped-VMEM ceiling on v5e/v6e/v7x


# ----------------------------------------------------------------------------
# tiling helpers
# ----------------------------------------------------------------------------
def _round_up(x, m):
    return (x + m - 1) // m * m


def _tile(dim, want, quantum):
    """Largest multiple of `quantum` that divides `dim`, at most max(want, quantum)."""
    t = min(want, dim)
    t -= t % quantum
    t = max(t, quantum)
    while dim % t:
        t -= quantum
    return t


# ----------------------------------------------------------------------------
# LN1 + fused QKV projection
# ----------------------------------------------------------------------------
def _ln_dense_kernel(x_ref, g_ref, b_ref, w_ref, bias_ref, o_ref, lnx_ref):
    # LayerNorm computed once per row tile (j == 0) and cached in VMEM scratch;
    # subsequent N tiles reuse it (no repeated XLU mean/var reductions).
    @pl.when(pl.program_id(1) == 0)
    def _():
        x = x_ref[...].astype(jnp.float32)
        mu = jnp.mean(x, axis=-1, keepdims=True)
        var = jnp.mean(jnp.square(x - mu), axis=-1, keepdims=True)
        h = (x - mu) * jax.lax.rsqrt(var + 1e-5)
        h = h * g_ref[...].astype(jnp.float32) + b_ref[...].astype(jnp.float32)
        lnx_ref[...] = h.astype(lnx_ref.dtype)

    y = jnp.dot(lnx_ref[...], w_ref[...], preferred_element_type=jnp.float32)
    y = y + bias_ref[...].astype(jnp.float32)
    o_ref[...] = y.astype(o_ref.dtype)


def ln_dense(x, ln_g, ln_b, w, bias, out_dtype=None, tm=256, tn=1536):
    """y = LayerNorm(x) @ w + bias.  x:[M,K], w:[K,N], bias:[1,N]."""
    M, K = x.shape
    N = w.shape[1]
    tm = _tile(M, tm, 128)
    tn = _tile(N, tn, 128)
    out_dtype = out_dtype or x.dtype
    return pl.pallas_call(
        _ln_dense_kernel,
        out_shape=jax.ShapeDtypeStruct((M, N), out_dtype),
        grid_spec=pltpu.PrefetchScalarGridSpec(
            num_scalar_prefetch=0,
            grid=(M // tm, N // tn),
            in_specs=[
                pl.BlockSpec((tm, K), lambda i, j: (i, 0)),
                pl.BlockSpec((1, K), lambda i, j: (0, 0)),
                pl.BlockSpec((1, K), lambda i, j: (0, 0)),
                pl.BlockSpec((K, tn), lambda i, j: (0, j)),
                pl.BlockSpec((1, tn), lambda i, j: (0, j)),
            ],
            out_specs=pl.BlockSpec((tm, tn), lambda i, j: (i, j)),
            scratch_shapes=[pltpu.VMEM((tm, K), x.dtype)],
        ),
        compiler_params=pltpu.CompilerParams(
            dimension_semantics=("parallel", "arbitrary"),
            vmem_limit_bytes=_VMEM_LIMIT),
    )(x, ln_g, ln_b, w, bias)


# ----------------------------------------------------------------------------
# Causal MHA (all heads per block) + out_proj + residual, fused
# ----------------------------------------------------------------------------
def _attn_block_kernel(qkv_ref, res_ref, wo_ref, bo_ref, o_ref, *, n_heads, dh, scale):
    Tp = qkv_ref.shape[1]
    D = n_heads * dh
    qkv = qkv_ref[0]                                       # (Tp, 3D) bf16
    # Fold 1/sqrt(dh) into q: Tp*D mults instead of Tp*Tp per head.
    q = (qkv[:, :D].astype(jnp.float32) * scale).astype(qkv.dtype)
    k = qkv[:, D:2 * D]
    v = qkv[:, 2 * D:]

    # Causal mask, built once per block and reused by every head.
    row = jax.lax.broadcasted_iota(jnp.int32, (Tp, Tp), 0)
    col = jax.lax.broadcasted_iota(jnp.int32, (Tp, Tp), 1)
    neg = jnp.where(col <= row, 0.0, -1e9).astype(jnp.float32)

    outs = []
    for h in range(n_heads):                               # static unroll over heads
        qh = q[:, h * dh:(h + 1) * dh]
        kh = k[:, h * dh:(h + 1) * dh]
        vh = v[:, h * dh:(h + 1) * dh]
        s = jnp.dot(qh, kh.T, preferred_element_type=jnp.float32) + neg
        s = s - jnp.max(s, axis=-1, keepdims=True)
        p = jnp.exp(s)
        p = p * pl.reciprocal(jnp.sum(p, axis=-1, keepdims=True), approx=True)
        outs.append(jnp.dot(p.astype(vh.dtype), vh,
                            preferred_element_type=jnp.float32))
    attn = outs[0] if n_heads == 1 else jnp.concatenate(outs, axis=-1)   # (Tp, D) f32

    # Fused epilogue: out_proj + bias + residual while still in VMEM.
    y = jnp.dot(attn.astype(wo_ref.dtype), wo_ref[...],
                preferred_element_type=jnp.float32)
    y = y + bo_ref[...].astype(jnp.float32) + res_ref[0].astype(jnp.float32)
    o_ref[0] = y.astype(o_ref.dtype)


def attn_block(qkv, x, w_o, b_o, B, Tp, D, n_heads, scale):
    """qkv:[B*Tp, 3D], x (residual):[B*Tp, D]  ->  x + out_proj(attn(qkv))."""
    dh = D // n_heads
    qkv3 = qkv.reshape(B, Tp, 3 * D)
    x3 = x.reshape(B, Tp, D)
    kernel = functools.partial(_attn_block_kernel, n_heads=n_heads, dh=dh, scale=scale)
    out = pl.pallas_call(
        kernel,
        out_shape=jax.ShapeDtypeStruct((B, Tp, D), x.dtype),
        grid_spec=pltpu.PrefetchScalarGridSpec(
            num_scalar_prefetch=0,
            grid=(B,),
            in_specs=[
                pl.BlockSpec((1, Tp, 3 * D), lambda b: (b, 0, 0)),   # fused QKV
                pl.BlockSpec((1, Tp, D), lambda b: (b, 0, 0)),       # residual
                pl.BlockSpec((D, D), lambda b: (0, 0)),              # w_o
                pl.BlockSpec((1, D), lambda b: (0, 0)),              # b_o
            ],
            out_specs=pl.BlockSpec((1, Tp, D), lambda b: (b, 0, 0)),
        ),
        compiler_params=pltpu.CompilerParams(
            dimension_semantics=("parallel",),
            vmem_limit_bytes=_VMEM_LIMIT),
    )(qkv3, x3, w_o, b_o)
    return out.reshape(B * Tp, D)


# ----------------------------------------------------------------------------
# Fused MLP: LN2 + fc1 + quickGELU + fc2 + bias + residual
# ----------------------------------------------------------------------------
def _mlp_kernel(x_ref, g_ref, b_ref, w1_ref, b1_ref, w2_ref, b2_ref, o_ref,
                lnx_ref, acc_ref):
    k = pl.program_id(1)

    @pl.when(k == 0)
    def _():
        x = x_ref[...].astype(jnp.float32)
        mu = jnp.mean(x, axis=-1, keepdims=True)
        var = jnp.mean(jnp.square(x - mu), axis=-1, keepdims=True)
        h = (x - mu) * jax.lax.rsqrt(var + 1e-5)
        h = h * g_ref[...].astype(jnp.float32) + b_ref[...].astype(jnp.float32)
        lnx_ref[...] = h.astype(lnx_ref.dtype)
        acc_ref[...] = jnp.zeros_like(acc_ref)

    h = jnp.dot(lnx_ref[...], w1_ref[...], preferred_element_type=jnp.float32)
    h = h + b1_ref[...].astype(jnp.float32)
    # quickGELU: h * sigmoid(1.702 h); exp + approx reciprocal go to the EUP slot.
    h = h * pl.reciprocal(1.0 + jnp.exp(-1.702 * h), approx=True)
    acc_ref[...] += jnp.dot(h.astype(w2_ref.dtype), w2_ref[...],
                            preferred_element_type=jnp.float32)

    @pl.when(k == pl.num_programs(1) - 1)
    def _():
        y = acc_ref[...] + b2_ref[...].astype(jnp.float32) + x_ref[...].astype(jnp.float32)
        o_ref[...] = y.astype(o_ref.dtype)


def mlp_block(x, ln_g, ln_b, w1, b1, w2, b2, tm=256, tk=1024):
    """y = x + (quickGELU(LayerNorm(x) @ w1 + b1) @ w2 + b2), no HBM hidden."""
    M, D = x.shape
    d_mlp = w1.shape[1]
    tm = _tile(M, tm, 128)
    tk = _tile(d_mlp, tk, 128)
    return pl.pallas_call(
        _mlp_kernel,
        out_shape=jax.ShapeDtypeStruct((M, D), x.dtype),
        grid_spec=pltpu.PrefetchScalarGridSpec(
            num_scalar_prefetch=0,
            grid=(M // tm, d_mlp // tk),
            in_specs=[
                pl.BlockSpec((tm, D), lambda i, k: (i, 0)),   # x (LN input + residual)
                pl.BlockSpec((1, D), lambda i, k: (0, 0)),    # ln2 gamma
                pl.BlockSpec((1, D), lambda i, k: (0, 0)),    # ln2 beta
                pl.BlockSpec((D, tk), lambda i, k: (0, k)),   # w_fc1 slab
                pl.BlockSpec((1, tk), lambda i, k: (0, k)),   # b_fc1 slab
                pl.BlockSpec((tk, D), lambda i, k: (k, 0)),   # w_fc2 slab
                pl.BlockSpec((1, D), lambda i, k: (0, 0)),    # b_fc2
            ],
            out_specs=pl.BlockSpec((tm, D), lambda i, k: (i, 0)),
            scratch_shapes=[pltpu.VMEM((tm, D), x.dtype),       # cached LN(x)
                            pltpu.VMEM((tm, D), jnp.float32)],  # f32 accumulator
        ),
        compiler_params=pltpu.CompilerParams(
            dimension_semantics=("parallel", "arbitrary"),
            vmem_limit_bytes=_VMEM_LIMIT),
    )(x, ln_g, ln_b, w1, b1, w2, b2)


# ----------------------------------------------------------------------------
# Final LayerNorm
# ----------------------------------------------------------------------------
def _layernorm_kernel(x_ref, g_ref, b_ref, o_ref):
    x = x_ref[...].astype(jnp.float32)
    mu = jnp.mean(x, axis=-1, keepdims=True)
    var = jnp.mean(jnp.square(x - mu), axis=-1, keepdims=True)
    y = (x - mu) * jax.lax.rsqrt(var + 1e-5)
    y = y * g_ref[...].astype(jnp.float32) + b_ref[...].astype(jnp.float32)
    o_ref[...] = y.astype(o_ref.dtype)


def layernorm(x, g, b, tm=128, out_dtype=None):
    M, D = x.shape
    tm = _tile(M, tm, 128)
    out_dtype = out_dtype or x.dtype
    return pl.pallas_call(
        _layernorm_kernel,
        out_shape=jax.ShapeDtypeStruct((M, D), out_dtype),
        grid_spec=pltpu.PrefetchScalarGridSpec(
            num_scalar_prefetch=0,
            grid=(M // tm,),
            in_specs=[
                pl.BlockSpec((tm, D), lambda i: (i, 0)),
                pl.BlockSpec((1, D), lambda i: (0, 0)),
                pl.BlockSpec((1, D), lambda i: (0, 0)),
            ],
            out_specs=pl.BlockSpec((tm, D), lambda i: (i, 0)),
        ),
        compiler_params=pltpu.CompilerParams(
            dimension_semantics=("parallel",),
            vmem_limit_bytes=_VMEM_LIMIT),
    )(x, g, b)


# ----------------------------------------------------------------------------
# CLIP text transformer built from the kernels above
# ----------------------------------------------------------------------------
def init_params(key, vocab_size, max_len, d_model, n_heads, d_mlp, n_layers,
                dtype=jnp.bfloat16):
    keys = jax.random.split(key, 2 + 4 * n_layers)
    ki = iter(keys)

    def rnd(k, shape, s=0.02):
        return (jax.random.normal(k, shape, jnp.float32) * s).astype(dtype)

    p = {
        "tok_emb": rnd(next(ki), (vocab_size, d_model)),
        "pos_emb": rnd(next(ki), (max_len, d_model), 0.01),
        "layers": [],
        "ln_f_g": jnp.ones((1, d_model), dtype),
        "ln_f_b": jnp.zeros((1, d_model), dtype),
    }
    for _ in range(n_layers):
        p["layers"].append({
            "ln1_g": jnp.ones((1, d_model), dtype),
            "ln1_b": jnp.zeros((1, d_model), dtype),
            "w_qkv": rnd(next(ki), (d_model, 3 * d_model)),   # fused Q/K/V
            "b_qkv": jnp.zeros((1, 3 * d_model), dtype),
            "w_o": rnd(next(ki), (d_model, d_model)),
            "b_o": jnp.zeros((1, d_model), dtype),
            "ln2_g": jnp.ones((1, d_model), dtype),
            "ln2_b": jnp.zeros((1, d_model), dtype),
            "w_fc1": rnd(next(ki), (d_model, d_mlp)),
            "b_fc1": jnp.zeros((1, d_mlp), dtype),
            "w_fc2": rnd(next(ki), (d_mlp, d_model)),
            "b_fc2": jnp.zeros((1, d_model), dtype),
        })
    return p


def frozen_clip_embedder_forward(params, tokens, n_heads):
    """CLIPTextModel forward, layer='last' -> last_hidden_state [B, T, D] (f32).

    tokens: int32 [B, T] (already tokenized; the HF string tokenizer itself has
    no tensor equivalent)."""
    B, T = tokens.shape
    D = params["tok_emb"].shape[1]
    dh = D // n_heads
    scale = 1.0 / (dh ** 0.5)
    act_dtype = params["tok_emb"].dtype

    # Token + positional embedding (gather stays as JAX glue).
    x = jnp.take(params["tok_emb"], tokens, axis=0).astype(jnp.float32)
    x = x + params["pos_emb"][None, :T, :].astype(jnp.float32)

    # Pad the sequence to a multiple of 128 so matmul rows and (Tp, Tp) score
    # matrices are lane/MXU-dense.  Padding sits at the tail, so the causal
    # mask keeps padded key columns away from valid rows; padded rows are
    # sliced off at the end.
    Tp = _round_up(T, 128)
    if Tp != T:
        x = jnp.pad(x, ((0, 0), (0, Tp - T), (0, 0)))
    x = x.astype(act_dtype).reshape(B * Tp, D)

    for layer in params["layers"]:
        # --- self-attention block (pre-LN, causal), 2 fused kernels ---
        qkv = ln_dense(x, layer["ln1_g"], layer["ln1_b"],
                       layer["w_qkv"], layer["b_qkv"])
        x = attn_block(qkv, x, layer["w_o"], layer["b_o"],
                       B, Tp, D, n_heads, scale)
        # --- MLP block (quickGELU), 1 fused kernel, no [M, d_mlp] round-trip ---
        x = mlp_block(x, layer["ln2_g"], layer["ln2_b"],
                      layer["w_fc1"], layer["b_fc1"],
                      layer["w_fc2"], layer["b_fc2"])

    # final LayerNorm -> last_hidden_state (f32)
    z = layernorm(x, params["ln_f_g"], params["ln_f_b"], out_dtype=jnp.float32)
    return z.reshape(B, Tp, D)[:, :T, :]


if __name__ == "__main__":
    # Small, CLIP-shaped config (real model: D=768, H=12, Dh=64, 12 layers, T=77).
    B, T = 2, 7                      # T=7 exercises the seq-padding path (Tp=128)
    D, H, D_MLP, N_LAYERS = 128, 2, 512, 2
    VOCAB, MAX_LEN = 512, 16

    key = jax.random.PRNGKey(0)
    k_params, k_tok = jax.random.split(key)
    params = init_params(k_params, VOCAB, MAX_LEN, D, H, D_MLP, N_LAYERS)

    # TODO(synk): the HuggingFace CLIPTokenizer (string -> ids) has no Pallas
    # equivalent; synthesize deterministic token ids instead.
    tokens = jax.random.randint(k_tok, (B, T), 0, VOCAB, dtype=jnp.int32)

    z = frozen_clip_embedder_forward(params, tokens, H)
    z = jax.block_until_ready(z)
    assert z.shape == (B, T, D)
    assert bool(jnp.all(jnp.isfinite(z)))
    print("KERNEL_OK")
</pallas_src>

<mosaic_0001>
module attributes {stable_mosaic.version = 11 : i64} {
  func.func @_ln_dense_kernel(%arg0: i32, %arg1: i32, %arg2: memref<256x128xbf16, #tpu.memory_space<vmem>>, %arg3: memref<1x128xbf16, #tpu.memory_space<vmem>>, %arg4: memref<1x128xbf16, #tpu.memory_space<vmem>>, %arg5: memref<128x384xbf16, #tpu.memory_space<vmem>>, %arg6: memref<1x384xbf16, #tpu.memory_space<vmem>>, %arg7: memref<256x384xbf16, #tpu.memory_space<vmem>>, %arg8: memref<256x128xbf16, #tpu.memory_space<vmem>>) attributes {dimension_semantics = [#tpu.dimension_semantics<parallel>, #tpu.dimension_semantics<arbitrary>], iteration_bounds = array<i64: 1, 1>, scalar_prefetch = 0 : i64, scratch_operands = 1 : i64, tpu.core_type = #tpu.core_type<tc>, window_params = [{transform_indices = @transform_0, window_bounds = array<i64: 256, 128>}, {pipeline_mode = #tpu.pipeline_mode<synchronous>, transform_indices = @transform_1, window_bounds = array<i64: 1, 128>}, {pipeline_mode = #tpu.pipeline_mode<synchronous>, transform_indices = @transform_2, window_bounds = array<i64: 1, 128>}, {transform_indices = @transform_3, window_bounds = array<i64: 128, 384>}, {transform_indices = @transform_4, window_bounds = array<i64: 1, 384>}, {transform_indices = @transform_5, window_bounds = array<i64: 256, 384>}]} {
    %c0_i32 = arith.constant 0 : i32
    %0 = arith.cmpi eq, %arg1, %c0_i32 : i32
    %1 = arith.extui %0 : i1 to i32
    %c0_i32_0 = arith.constant 0 : i32
    %2 = arith.cmpi ne, %1, %c0_i32_0 : i32
    scf.if %2 {
      %c0_8 = arith.constant 0 : index
      %c0_9 = arith.constant 0 : index
      %12 = vector.load %arg2[%c0_8, %c0_9] : memref<256x128xbf16, #tpu.memory_space<vmem>>, vector<256x128xbf16>
      %13 = arith.extf %12 : vector<256x128xbf16> to vector<256x128xf32>
      %cst_10 = arith.constant dense<0.000000e+00> : vector<256xf32>
      %14 = vector.multi_reduction <add>, %13, %cst_10 [1] : vector<256x128xf32> to vector<256xf32>
      %15 = vector.shape_cast %14 : vector<256xf32> to vector<256x1xf32>
      %cst_11 = arith.constant 1.280000e+02 : f32
      %16 = vector.broadcast %cst_11 : f32 to vector<256x1xf32>
      %17 = arith.divf %15, %16 : vector<256x1xf32>
      %18 = vector.broadcast %17 : vector<256x1xf32> to vector<256x128xf32>
      %19 = arith.subf %13, %18 : vector<256x128xf32>
      %20 = arith.mulf %19, %19 : vector<256x128xf32>
      %cst_12 = arith.constant dense<0.000000e+00> : vector<256xf32>
      %21 = vector.multi_reduction <add>, %20, %cst_12 [1] : vector<256x128xf32> to vector<256xf32>
      %22 = vector.shape_cast %21 : vector<256xf32> to vector<256x1xf32>
      %cst_13 = arith.constant 1.280000e+02 : f32
      %23 = vector.broadcast %cst_13 : f32 to vector<256x1xf32>
      %24 = arith.divf %22, %23 : vector<256x1xf32>
      %25 = vector.broadcast %17 : vector<256x1xf32> to vector<256x128xf32>
      %26 = arith.subf %13, %25 : vector<256x128xf32>
      %cst_14 = arith.constant 9.99999974E-6 : f32
      %27 = vector.broadcast %cst_14 : f32 to vector<256x1xf32>
      %28 = arith.addf %24, %27 : vector<256x1xf32>
      %29 = math.rsqrt %28 : vector<256x1xf32>
      %30 = vector.broadcast %29 : vector<256x1xf32> to vector<256x128xf32>
      %31 = arith.mulf %26, %30 : vector<256x128xf32>
      %c0_15 = arith.constant 0 : index
      %c0_16 = arith.constant 0 : index
      %32 = vector.load %arg3[%c0_15, %c0_16] : memref<1x128xbf16, #tpu.memory_space<vmem>>, vector<1x128xbf16>
      %33 = arith.extf %32 : vector<1x128xbf16> to vector<1x128xf32>
      %34 = vector.broadcast %33 : vector<1x128xf32> to vector<256x128xf32>
      %35 = arith.mulf %31, %34 : vector<256x128xf32>
      %c0_17 = arith.constant 0 : index
      %c0_18 = arith.constant 0 : index
      %36 = vector.load %arg4[%c0_17, %c0_18] : memref<1x128xbf16, #tpu.memory_space<vmem>>, vector<1x128xbf16>
      %37 = arith.extf %36 : vector<1x128xbf16> to vector<1x128xf32>
      %38 = vector.broadcast %37 : vector<1x128xf32> to vector<256x128xf32>
      %39 = arith.addf %35, %38 : vector<256x128xf32>
      %40 = arith.truncf %39 : vector<256x128xf32> to vector<256x128xbf16>
      %c0_19 = arith.constant 0 : index
      %c0_20 = arith.constant 0 : index
      %41 = vector.load %arg8[%c0_19, %c0_20] : memref<256x128xbf16, #tpu.memory_space<vmem>>, vector<256x128xbf16>
      tpu.vector_store %arg8[%c0_19, %c0_20], %40 {strides = array<i32>} : memref<256x128xbf16, #tpu.memory_space<vmem>>, vector<256x128xbf16>,
    } else {
    }
    %c0 = arith.constant 0 : index
    %c0_1 = arith.constant 0 : index
    %3 = vector.load %arg8[%c0, %c0_1] : memref<256x128xbf16, #tpu.memory_space<vmem>>, vector<256x128xbf16>
    %c0_2 = arith.constant 0 : index
    %c0_3 = arith.constant 0 : index
    %4 = vector.load %arg5[%c0_2, %c0_3] : memref<128x384xbf16, #tpu.memory_space<vmem>>, vector<128x384xbf16>
    %cst = arith.constant dense<0.000000e+00> : vector<256x384xf32>
    %5 = tpu.matmul %3, %4, %cst {dimension_numbers = #tpu.dot_dimension_numbers<[1], [0], [0], [1], [0, 0, 1, 1], [], []>} : vector<256x128xbf16>, vector<128x384xbf16>, vector<256x384xf32> -> vector<256x384xf32>
    %c0_4 = arith.constant 0 : index
    %c0_5 = arith.constant 0 : index
    %6 = vector.load %arg6[%c0_4, %c0_5] : memref<1x384xbf16, #tpu.memory_space<vmem>>, vector<1x384xbf16>
    %7 = arith.extf %6 : vector<1x384xbf16> to vector<1x384xf32>
    %8 = vector.broadcast %7 : vector<1x384xf32> to vector<256x384xf32>
    %9 = arith.addf %5, %8 : vector<256x384xf32>
    %10 = arith.truncf %9 : vector<256x384xf32> to vector<256x384xbf16>
    %c0_6 = arith.constant 0 : index
    %c0_7 = arith.constant 0 : index
    %11 = vector.load %arg7[%c0_6, %c0_7] : memref<256x384xbf16, #tpu.memory_space<vmem>>, vector<256x384xbf16>
    tpu.vector_store %arg7[%c0_6, %c0_7], %10 {strides = array<i32>} : memref<256x384xbf16, #tpu.memory_space<vmem>>, vector<256x384xbf16>,
    return
  }
  func.func @transform_0(%arg0: i32, %arg1: i32) -> (i32, i32) {
    %c0_i32 = arith.constant 0 : i32
    %c0_i32_0 = arith.constant 0 : i32
    return %arg0, %c0_i32 : i32, i32
  }
  func.func @transform_1(%arg0: i32, %arg1: i32) -> (i32, i32) {
    %c0_i32 = arith.constant 0 : i32
    %c0_i32_0 = arith.constant 0 : i32
    %c0_i32_1 = arith.constant 0 : i32
    return %c0_i32, %c0_i32_0 : i32, i32
  }
  func.func @transform_2(%arg0: i32, %arg1: i32) -> (i32, i32) {
    %c0_i32 = arith.constant 0 : i32
    %c0_i32_0 = arith.constant 0 : i32
    %c0_i32_1 = arith.constant 0 : i32
    return %c0_i32, %c0_i32_0 : i32, i32
  }
  func.func @transform_3(%arg0: i32, %arg1: i32) -> (i32, i32) {
    %c0_i32 = arith.constant 0 : i32
    %c0_i32_0 = arith.constant 0 : i32
    return %c0_i32, %arg1 : i32, i32
  }
  func.func @transform_4(%arg0: i32, %arg1: i32) -> (i32, i32) {
    %c0_i32 = arith.constant 0 : i32
    %c0_i32_0 = arith.constant 0 : i32
    return %c0_i32, %arg1 : i32, i32
  }
  func.func @transform_5(%arg0: i32, %arg1: i32) -> (i32, i32) {
    %c0_i32 = arith.constant 0 : i32
    return %arg0, %arg1 : i32, i32
  }
}

</mosaic_0001>

<bundles_post_ra>
// kernel: tpu_custom_call.1
= control target key start
LH: loop header
LB: loop body
LE: loop exit
PB: predicated region body
PF: predicated region fallthrough
CT: control target
= control target key end

     0   :  { %10 = vsyncpa [#allocation4], 0  ;;  %s2717_s0 = inlined_call_operand.hbm [shape: bf16[256,128], index: 0, kind: input, shape index: {}]   ;;  %s2718_s1 = inlined_call_operand.vmem [shape: bf16[1,128], index: 1, kind: input, shape index: {}]   ;;  %s2719_s2 = inlined_call_operand.vmem [shape: bf16[1,128], index: 2, kind: input, shape index: {}]   ;;  %s2720_s3 = inlined_call_operand.hbm [shape: bf16[128,384], index: 3, kind: input, shape index: {}]   ;;  %s2721_s4 = inlined_call_operand.vmem [shape: bf16[1,384], index: 4, kind: input, shape index: {}]   ;;  %s2722_s5 = inlined_call_operand.hbm [shape: bf16[256,384], index: 5, kind: output, shape index: {}]  }
   0x1   :  { %11 = vsyncpa [#allocation7], 0 }
   0x2   :  { %12 = vsyncpa [#allocation5], 0  ;;  %s2036_s18 = smov [#allocation3]   ;;  %s1964_s22 = scalar_lea.hbm %s2717_s0, 2048 }
   0x3   :  { %s18_s19 = sshll.u32 %s2036_s18, 4  ;;  %p1965_p0 = scmp.ne.s32.totalorder %s2717_s0, %s1964_s22  ;;  %s19_s19 = int_to_ptr.vmem [resolvable:$true] %s18_s19 }
   0x4   :  { %p1968_p1 = scmp.lt.u32.totalorder %s1964_s22, %s2717_s0 }
   0x6   :  { %p1970_p2 = pnand %p1968_p1, %p1965_p0 }
   0x8   :  { %1973 = shalt.err (!%p1970_p2)
}
   0x9   :  { %s1974_s27 = scalar_lea.vmem %s19_s19, 2048  ;;  %p1979_p4 = scmp.lt.s32.totalorder %s19_s19, %s19_s19 }
   0xa   :  { %p1975_p3 = scmp.ne.s32.totalorder %s19_s19, %s1974_s27  ;;  %p1980_p5 = scmp.lt.s32.totalorder %s1974_s27, %s1974_s27 }
   0xc   :  { %p1981_p6 = por %p1980_p5, %p1979_p4 }
   0xe   :  { %p1982_p7 = pnand %p1981_p6, %p1975_p3 }
  0x10   :  { %1985 = shalt.err (!%p1982_p7)
}
  0x11   :  { %s2037_s28 = smov 64   ;;  %s2038_s29 = smov 4  }
  0x12   :  { %24 = dma.hbm_to_vmem [thread:$0]  %s2717_s0, 2048, %s19_s19, [#allocation4], %s2037_s28, %s2037_s28, %s2038_s29  }
  0x13   :  { %s2039_s7 = smov [#allocation6]   ;;  %s1986_s11 = scalar_lea.hbm %s2720_s3, 3072 }
  0x14   :  { %s34_s8 = sshll.u32 %s2039_s7, 4  ;;  %p1987_p8 = scmp.ne.s32.totalorder %s2720_s3, %s1986_s11  ;;  %s35_s8 = int_to_ptr.vmem [resolvable:$true] %s34_s8 }
  0x15   :  { %p1990_p9 = scmp.lt.u32.totalorder %s1986_s11, %s2720_s3 }
  0x17   :  { %p1992_p10 = pnand %p1990_p9, %p1987_p8 }
  0x19   :  { %1995 = shalt.err (!%p1992_p10)
}
  0x1a   :  { %s1996_s16 = scalar_lea.vmem %s35_s8, 3072  ;;  %p2001_p12 = scmp.lt.s32.totalorder %s35_s8, %s35_s8 }
  0x1b   :  { %p1997_p11 = scmp.ne.s32.totalorder %s35_s8, %s1996_s16  ;;  %p2002_p13 = scmp.lt.s32.totalorder %s1996_s16, %s1996_s16 }
  0x1d   :  { %p2003_p0 = por %p2002_p13, %p2001_p12 }
  0x1f   :  { %p2004_p1 = pnand %p2003_p0, %p1997_p11 }
  0x21   :  { %2007 = shalt.err (!%p2004_p1)
}
  0x22   :  { %s2040_s0 = smov 192   ;;  %s2041_s17 = smov 12  }
  0x23   :  { %40 = dma.hbm_to_vmem [thread:$0]  %s2720_s3, 3072, %s35_s8, [#allocation7], %s2040_s0, %s2040_s0, %s2041_s17  }
  0x24   :  { %2030 = dma.done.wait [#allocation4], 2048  }
  0x25   :  { %2031 = vsyncadd [#allocation4], 4294965248 }
  0x26   :  { %2032 = dma.done.wait [#allocation7], 3072  }
  0x27   :  { %2033 = vsyncadd [#allocation7], 4294964224  ;;  %v2101_v0 = vld [vmem:[#allocation3] sm:$0xff]   ;;  %v2113_v6 = vld [vmem:[#allocation3 + $0x8] sm:$0xff]  }
  0x28   :  { %v2103_v1 = vld [vmem:[#allocation3 + $0x60] sm:$0xff]   ;;  %v1695_v2 = vunpack.c.l.bf16 %v2101_v0  ;;  %v1696_v4 = vunpack.c.h.bf16 %v2101_v0  ;;  %v2115_v7 = vld [vmem:[#allocation3 + $0x68] sm:$0xff]   ;;  %v1699_v8 = vunpack.c.l.bf16 %v2113_v6  ;;  %v1700_v9 = vunpack.c.h.bf16 %v2113_v6  ;;  %v2123_v10 = vld [vmem:[#allocation3 + $0x10] sm:$0xff]  }
  0x29   :  { %v1743_v3 = vunpack.c.l.bf16 %v2103_v1  ;;  %v1744_v5 = vunpack.c.h.bf16 %v2103_v1  ;;  %v1747_v11 = vunpack.c.l.bf16 %v2115_v7  ;;  %v1748_v12 = vunpack.c.h.bf16 %v2115_v7  ;;  %v2137_v15 = vld [vmem:[#allocation3 + $0x70] sm:$0xff]   ;;  %v2145_v18 = vld [vmem:[#allocation3 + $0x18] sm:$0xff]   ;;  %v2161_v24 = vld [vmem:[#allocation3 + $0x20] sm:$0xff]  }
  0x2a   :  { %118 = vadd.xlane.f32.xlu0 %v1695_v2  ;;  %v1703_v13 = vunpack.c.l.bf16 %v2123_v10  ;;  %v1704_v14 = vunpack.c.h.bf16 %v2123_v10  ;;  %v1751_v16 = vunpack.c.l.bf16 %v2137_v15  ;;  %v1752_v17 = vunpack.c.h.bf16 %v2137_v15  ;;  %v2153_v21 = vld [vmem:[#allocation3 + $0x78] sm:$0xff]   ;;  %v2169_v27 = vld [vmem:[#allocation3 + $0x28] sm:$0xff]   ;;  %v2177_v30 = vld [vmem:[#allocation3 + $0x30] sm:$0xff]  }
  0x2b   :  { %166 = vadd.xlane.f32.xlu1 %v1743_v3  ;;  %v1707_v19 = vunpack.c.l.bf16 %v2145_v18  ;;  %v1708_v20 = vunpack.c.h.bf16 %v2145_v18  ;;  %v1755_v22 = vunpack.c.l.bf16 %v2153_v21  ;;  %v1756_v23 = vunpack.c.h.bf16 %v2153_v21  ;;  %v2185_v33 = vld [vmem:[#allocation3 + $0x38] sm:$0xff]   ;;  %v2193_v36 = vld [vmem:[#allocation3 + $0x40] sm:$0xff]   ;;  %v2201_v39 = vld [vmem:[#allocation3 + $0x48] sm:$0xff]  }
  0x2c   :  { %v1711_v25 = vunpack.c.l.bf16 %v2161_v24  ;;  %v1712_v26 = vunpack.c.h.bf16 %v2161_v24  ;;  %v1715_v28 = vunpack.c.l.bf16 %v2169_v27  ;;  %v1716_v29 = vunpack.c.h.bf16 %v2169_v27  ;;  %v2209_v42 = vld [vmem:[#allocation3 + $0x50] sm:$0xff]   ;;  %v2217_v45 = vld [vmem:[#allocation3 + $0x58] sm:$0xff]   ;;  %v1870_v49 = vld [vmem:[#allocation6] ss:$12 sps:$4 sm:$0xff]  }
  0x2d   :  { %v1719_v31 = vunpack.c.l.bf16 %v2177_v30  ;;  %v1720_v32 = vunpack.c.h.bf16 %v2177_v30  ;;  %v1723_v34 = vunpack.c.l.bf16 %v2185_v33  ;;  %v1724_v35 = vunpack.c.h.bf16 %v2185_v33  ;;  %v1868_v48 = vld [vmem:[#allocation6 + $0x4] ss:$12 sps:$4 sm:$0xff]   ;;  %v1871_v50 = vld [vmem:[#allocation6 + $0x1c] ss:$12 sps:$4 sm:$0xff]  }
  0x2e   :  { %120 = vadd.xlane.f32.xlu0 %v1696_v4  ;;  %v1727_v37 = vunpack.c.l.bf16 %v2193_v36  ;;  %v1728_v38 = vunpack.c.h.bf16 %v2193_v36  ;;  %v1731_v40 = vunpack.c.l.bf16 %v2201_v39  ;;  %v1732_v41 = vunpack.c.h.bf16 %v2201_v39  ;;  %785 = vmatprep.subr.bf16.mxu0 %v1868_v48 }
  0x2f   :  { %168 = vadd.xlane.f32.xlu1 %v1744_v5  ;;  %v1735_v43 = vunpack.c.l.bf16 %v2209_v42  ;;  %v1736_v44 = vunpack.c.h.bf16 %v2209_v42  ;;  %v1739_v46 = vunpack.c.l.bf16 %v2217_v45  ;;  %v1740_v47 = vunpack.c.h.bf16 %v2217_v45  ;;  %1844 = vmatprep.subr.bf16.mxu1 %v1868_v48 }
  0x30   :  { %786 = vmatpush1.bf16.msra.mxu0 %v1870_v49  ;;  %1852 = vmatpush1.bf16.msra.mxu1 %v1870_v49  ;;  %v473_v45 = vlaneseq }
  0x31   :  { %787 = vmatprep.subr.bf16.mxu0 %v1871_v50  ;;  %1845 = vmatprep.subr.bf16.mxu1 %v1871_v50 }
  0x32   :  { %122 = vadd.xlane.f32.xlu0 %v1699_v8 }
  0x33   :  { %124 = vadd.xlane.f32.xlu1 %v1700_v9 }
  0x36   :  { %170 = vadd.xlane.f32.xlu0 %v1747_v11 }
  0x37   :  { %172 = vadd.xlane.f32.xlu1 %v1748_v12 }
  0x3a   :  { %126 = vadd.xlane.f32.xlu0 %v1703_v13 }
  0x3b   :  { %128 = vadd.xlane.f32.xlu1 %v1704_v14 }
  0x3e   :  { %174 = vadd.xlane.f32.xlu0 %v1751_v16 }
  0x3f   :  { %176 = vadd.xlane.f32.xlu1 %v1752_v17 }
  0x42   :  { %130 = vadd.xlane.f32.xlu0 %v1707_v19 }
  0x43   :  { %132 = vadd.xlane.f32.xlu1 %v1708_v20 }
  0x46   :  { %178 = vadd.xlane.f32.xlu0 %v1755_v22 }
  0x47   :  { %180 = vadd.xlane.f32.xlu1 %v1756_v23 }
  0x4a   :  { %134 = vadd.xlane.f32.xlu0 %v1711_v25 }
  0x4b   :  { %136 = vadd.xlane.f32.xlu1 %v1712_v26 }
  0x4e   :  { %138 = vadd.xlane.f32.xlu0 %v1715_v28 }
  0x4f   :  { %140 = vadd.xlane.f32.xlu1 %v1716_v29 }
  0x52   :  { %142 = vadd.xlane.f32.xlu0 %v1719_v31 }
  0x53   :  { %144 = vadd.xlane.f32.xlu1 %v1720_v32 }
  0x56   :  { %146 = vadd.xlane.f32.xlu0 %v1723_v34 }
  0x57   :  { %148 = vadd.xlane.f32.xlu1 %v1724_v35 }
  0x5a   :  { %150 = vadd.xlane.f32.xlu0 %v1727_v37 }
  0x5b   :  { %152 = vadd.xlane.f32.xlu1 %v1728_v38 }
  0x5e   :  { %154 = vadd.xlane.f32.xlu0 %v1731_v40 }
  0x5f   :  { %156 = vadd.xlane.f32.xlu1 %v1732_v41 }
  0x62   :  { %158 = vadd.xlane.f32.xlu0 %v1735_v43 }
  0x63   :  { %160 = vadd.xlane.f32.xlu1 %v1736_v44 }
  0x66   :  { %162 = vadd.xlane.f32.xlu0 %v1739_v46 }
  0x67   :  { %164 = vadd.xlane.f32.xlu1 %v1740_v47 }
  0xb7   :  { %v119_v51 = vpop.xlane.xlu0 %118 }
  0xb8   :  { %v167_v52 = vpop.xlane.xlu1 %166  ;;  %v183_v53 = vmul.f32 0.0078125, %v119_v51 }
  0xb9   :  { %v207_v54 = vmul.f32 0.0078125, %v167_v52 }
  0xba   :  { %v2231_v55 = vsub.f32 %v1695_v2, %v183_v53 }
  0xbb   :  { %v2235_v56 = vsub.f32 %v1743_v3, %v207_v54  ;;  %v121_v57 = vpop.xlane.xlu0 %120 }
  0xbc   :  { %v169_v58 = vpop.xlane.xlu1 %168  ;;  %v184_v59 = vmul.f32 0.0078125, %v121_v57  ;;  %v247_v60 = vmul.f32 %v2231_v55, %v2231_v55 }
  0xbd   :  { %v208_v61 = vmul.f32 0.0078125, %v169_v58  ;;  %v271_v2 = vmul.f32 %v2235_v56, %v2235_v56 }
  0xbe   :  { %v2241_v62 = vsub.f32 %v1696_v4, %v184_v59  ;;  %279 = vadd.xlane.f32.xlu0 %v247_v60 }
  0xbf   :  { %v2245_v63 = vsub.f32 %v1744_v5, %v208_v61  ;;  %v123_v3 = vpop.xlane.xlu0 %122 }
  0xc0   :  { %v125_v48 = vpop.xlane.xlu1 %124  ;;  %v185_v49 = vmul.f32 0.0078125, %v123_v3  ;;  %v248_v50 = vmul.f32 %v2241_v62, %v2241_v62  ;;  %v1873_v3 = vld [vmem:[#allocation6 + $0x18] ss:$12 sps:$4 sm:$0xff]  }
  0xc1   :  { %v186_v51 = vmul.f32 0.0078125, %v125_v48  ;;  %v272_v4 = vmul.f32 %v2245_v63, %v2245_v63  ;;  %788 = vmatpush1.bf16.msra.mxu0 %v1873_v3  ;;  %1853 = vmatpush1.bf16.msra.mxu1 %v1873_v3 }
  0xc2   :  { %v2253_v0 = vsub.f32 %v1699_v8, %v185_v49  ;;  %327 = vadd.xlane.f32.xlu0 %v271_v2  ;;  %281 = vadd.xlane.f32.xlu1 %v248_v50 }
  0xc3   :  { %v2257_v1 = vsub.f32 %v1700_v9, %v186_v51  ;;  %v171_v5 = vpop.xlane.xlu0 %170 }
  0xc4   :  { %v173_v52 = vpop.xlane.xlu1 %172  ;;  %v209_v53 = vmul.f32 0.0078125, %v171_v5  ;;  %v249_v54 = vmul.f32 %v2253_v0, %v2253_v0 }
  0xc5   :  { %v210_v57 = vmul.f32 0.0078125, %v173_v52  ;;  %v250_v9 = vmul.f32 %v2257_v1, %v2257_v1 }
  0xc6   :  { %v2265_v8 = vsub.f32 %v1747_v11, %v209_v53  ;;  %329 = vadd.xlane.f32.xlu1 %v272_v4  ;;  %283 = vadd.xlane.f32.xlu0 %v249_v54  ;;  %v1876_v54 = vld [vmem:[#allocation6 + $0x30] ss:$12 sps:$4 sm:$0xff]  }
  0xc7   :  { %v2269_v6 = vsub.f32 %v1748_v12, %v210_v57  ;;  %v127_v58 = vpop.xlane.xlu0 %126 }
  0xc8   :  { %v129_v59 = vpop.xlane.xlu1 %128  ;;  %v187_v60 = vmul.f32 0.0078125, %v127_v58  ;;  %v273_v61 = vmul.f32 %v2265_v8, %v2265_v8 }
  0xc9   :  { %v188_v2 = vmul.f32 0.0078125, %v129_v59  ;;  %v274_v12 = vmul.f32 %v2269_v6, %v2269_v6  ;;  %v1877_v59 = vld [vmem:[#allocation6 + $0x4c] ss:$12 sps:$4 sm:$0xff]  }
  0xca   :  { %v2277_v11 = vsub.f32 %v1703_v13, %v187_v60  ;;  %285 = vadd.xlane.f32.xlu1 %v250_v9  ;;  %331 = vadd.xlane.f32.xlu0 %v273_v61  ;;  %v1874_v13 = vld [vmem:[#allocation6 + $0x34] ss:$12 sps:$4 sm:$0xff]  }
  0xcb   :  { %v2281_v7 = vsub.f32 %v1704_v14, %v188_v2  ;;  %v175_v48 = vpop.xlane.xlu0 %174  ;;  %789 = vmatprep.subr.bf16.mxu0 %v1874_v13  ;;  %1846 = vmatprep.subr.bf16.mxu1 %v1874_v13  ;;  %v1879_v2 = vld [vmem:[#allocation6 + $0x48] ss:$12 sps:$4 sm:$0xff]  }
  0xcc   :  { %v177_v49 = vpop.xlane.xlu1 %176  ;;  %v211_v50 = vmul.f32 0.0078125, %v175_v48  ;;  %v251_v51 = vmul.f32 %v2277_v11, %v2277_v11  ;;  %790 = vmatpush1.bf16.msra.mxu0 %v1876_v54  ;;  %1854 = vmatpush1.bf16.msra.mxu1 %v1876_v54 }
  0xcd   :  { %v212_v4 = vmul.f32 0.0078125, %v177_v49  ;;  %v252_v14 = vmul.f32 %v2281_v7, %v2281_v7  ;;  %791 = vmatprep.subr.bf16.mxu0 %v1877_v59  ;;  %1847 = vmatprep.subr.bf16.mxu1 %v1877_v59  ;;  %v1880_v49 = vld [vmem:[#allocation6 + $0x64] ss:$12 sps:$4 sm:$0xff]  }
  0xce   :  { %v2289_v5 = vsub.f32 %v1751_v16, %v211_v50  ;;  %333 = vadd.xlane.f32.xlu1 %v274_v12  ;;  %287 = vadd.xlane.f32.xlu0 %v251_v51 }
  0xcf   :  { %v2293_v10 = vsub.f32 %v1752_v17, %v212_v4  ;;  %v131_v52 = vpop.xlane.xlu0 %130  ;;  %v1882_v4 = vld [vmem:[#allocation6 + $0x60] ss:$12 sps:$4 sm:$0xff]  }
  0xd0   :  { %v133_v53 = vpop.xlane.xlu1 %132  ;;  %v189_v57 = vmul.f32 0.0078125, %v131_v52  ;;  %v275_v9 = vmul.f32 %v2289_v5, %v2289_v5  ;;  %792 = vmatpush1.bf16.msra.mxu0 %v1879_v2  ;;  %1855 = vmatpush1.bf16.msra.mxu1 %v1879_v2 }
  0xd1   :  { %v190_v16 = vmul.f32 0.0078125, %v133_v53  ;;  %v276_v58 = vmul.f32 %v2293_v10, %v2293_v10  ;;  %793 = vmatprep.subr.bf16.mxu0 %v1880_v49  ;;  %1848 = vmatprep.subr.bf16.mxu1 %v1880_v49  ;;  %v1883_v53 = vld [vmem:[#allocation6 + $0x7c] ss:$12 sps:$4 sm:$0xff]   ;;  %v1889_v49 = vld [vmem:[#allocation6 + $0xac] ss:$12 sps:$4 sm:$0xff]  }
  0xd2   :  { %v2301_v15 = vsub.f32 %v1707_v19, %v189_v57  ;;  %289 = vadd.xlane.f32.xlu1 %v252_v14  ;;  %335 = vadd.xlane.f32.xlu0 %v275_v9  ;;  %v1885_v9 = vld [vmem:[#allocation6 + $0x78] ss:$12 sps:$4 sm:$0xff]  }
  0xd3   :  { %v2305_v17 = vsub.f32 %v1708_v20, %v190_v16  ;;  %v179_v60 = vpop.xlane.xlu0 %178 }
  0xd4   :  { %v181_v61 = vpop.xlane.xlu1 %180  ;;  %v213_v12 = vmul.f32 0.0078125, %v179_v60  ;;  %v253_v3 = vmul.f32 %v2301_v15, %v2301_v15  ;;  %794 = vmatpush1.bf16.msra.mxu0 %v1882_v4  ;;  %1856 = vmatpush1.bf16.msra.mxu1 %v1882_v4  ;;  %v1886_v60 = vld [vmem:[#allocation6 + $0x94] ss:$12 sps:$4 sm:$0xff]  }
  0xd5   :  { %v214_v48 = vmul.f32 0.0078125, %v181_v61  ;;  %v254_v20 = vmul.f32 %v2305_v17, %v2305_v17  ;;  %795 = vmatprep.subr.bf16.mxu0 %v1883_v53  ;;  %1849 = vmatprep.subr.bf16.mxu1 %v1883_v53  ;;  %v1891_v4 = vld [vmem:[#allocation6 + $0xa8] ss:$12 sps:$4 sm:$0xff]  }
  0xd6   :  { %v2313_v18 = vsub.f32 %v1755_v22, %v213_v12  ;;  %337 = vadd.xlane.f32.xlu1 %v276_v58  ;;  %291 = vadd.xlane.f32.xlu0 %v253_v3  ;;  %v1888_v12 = vld [vmem:[#allocation6 + $0x90] ss:$12 sps:$4 sm:$0xff]  }
  0xd7   :  { %v2317_v19 = vsub.f32 %v1756_v23, %v214_v48  ;;  %v135_v50 = vpop.xlane.xlu0 %134 }
  0xd8   :  { %v137_v51 = vpop.xlane.xlu1 %136  ;;  %v191_v13 = vmul.f32 0.0078125, %v135_v50  ;;  %v277_v14 = vmul.f32 %v2313_v18, %v2313_v18  ;;  %796 = vmatpush1.bf16.msra.mxu0 %v1885_v9  ;;  %1857 = vmatpush1.bf16.msra.mxu1 %v1885_v9 }
  0xd9   :  { %v192_v52 = vmul.f32 0.0078125, %v137_v51  ;;  %v278_v23 = vmul.f32 %v2317_v19, %v2317_v19  ;;  %797 = vmatprep.subr.bf16.mxu0 %v1886_v60  ;;  %1850 = vmatprep.subr.bf16.mxu1 %v1886_v60 }
  0xda   :  { %v2325_v21 = vsub.f32 %v1711_v25, %v191_v13  ;;  %293 = vadd.xlane.f32.xlu1 %v254_v20  ;;  %339 = vadd.xlane.f32.xlu0 %v277_v14 }
  0xdb   :  { %v2329_v22 = vsub.f32 %v1712_v26, %v192_v52  ;;  %v139_v54 = vpop.xlane.xlu0 %138 }
  0xdc   :  { %v141_v57 = vpop.xlane.xlu1 %140  ;;  %v193_v16 = vmul.f32 0.0078125, %v139_v54  ;;  %v255_v58 = vmul.f32 %v2325_v21, %v2325_v21  ;;  %798 = vmatpush1.bf16.msra.mxu0 %v1888_v12  ;;  %1858 = vmatpush1.bf16.msra.mxu1 %v1888_v12  ;;  %v2042_v54 = vmov 0  }
  0xdd   :  { %v194_v59 = vmul.f32 0.0078125, %v141_v57  ;;  %v256_v26 = vmul.f32 %v2329_v22, %v2329_v22  ;;  %799 = vmatprep.subr.bf16.mxu0 %v1889_v49  ;;  %1851 = vmatprep.subr.bf16.mxu1 %v1889_v49 }
  0xde   :  { %v2337_v24 = vsub.f32 %v1715_v28, %v193_v16  ;;  %341 = vadd.xlane.f32.xlu1 %v278_v23  ;;  %295 = vadd.xlane.f32.xlu0 %v255_v58  ;;  %v2383_v58 = vld [vmem:[#allocation6 + $0x8] ss:$12 sps:$4 sm:$0xff]  }
  0xdf   :  { %v2341_v25 = vsub.f32 %v1716_v29, %v194_v59  ;;  %v143_v61 = vpop.xlane.xlu0 %142  ;;  %817 = vmatprep.mubr.bf16.mxu0 %v2042_v54  ;;  %937 = vmatprep.mubr.bf16.mxu1 %v2042_v54 }
  0xe0   :  { %v145_v2 = vpop.xlane.xlu1 %144  ;;  %v195_v3 = vmul.f32 0.0078125, %v143_v61  ;;  %v257_v48 = vmul.f32 %v2337_v24, %v2337_v24  ;;  %800 = vmatpush1.bf16.msra.mxu0 %v1891_v4  ;;  %1859 = vmatpush1.bf16.msra.mxu1 %v1891_v4 }
  0xe1   :  { %v196_v20 = vmul.f32 0.0078125, %v145_v2  ;;  %v258_v29 = vmul.f32 %v2341_v25, %v2341_v25  ;;  %1796 = vmatprep.subr.bf16.mxu1 %v2383_v58 }
  0xe2   :  { %v2349_v27 = vsub.f32 %v1719_v31, %v195_v3  ;;  %297 = vadd.xlane.f32.xlu1 %v256_v26  ;;  %299 = vadd.xlane.f32.xlu0 %v257_v48 }
  0xe3   :  { %v2353_v28 = vsub.f32 %v1720_v32, %v196_v20  ;;  %v147_v50 = vpop.xlane.xlu0 %146 }
  0xe4   :  { %v149_v51 = vpop.xlane.xlu1 %148  ;;  %v197_v13 = vmul.f32 0.0078125, %v147_v50  ;;  %v259_v14 = vmul.f32 %v2349_v27, %v2349_v27 }
  0xe5   :  { %v198_v52 = vmul.f32 0.0078125, %v149_v51  ;;  %v260_v32 = vmul.f32 %v2353_v28, %v2353_v28 }
  0xe6   :  { %v2361_v30 = vsub.f32 %v1723_v34, %v197_v13  ;;  %301 = vadd.xlane.f32.xlu1 %v258_v29  ;;  %303 = vadd.xlane.f32.xlu0 %v259_v14 }
  0xe7   :  { %v2365_v31 = vsub.f32 %v1724_v35, %v198_v52  ;;  %v151_v23 = vpop.xlane.xlu0 %150 }
  0xe8   :  { %v153_v53 = vpop.xlane.xlu1 %152  ;;  %v199_v57 = vmul.f32 0.0078125, %v151_v23  ;;  %v261_v34 = vmul.f32 %v2361_v30, %v2361_v30 }
  0xe9   :  { %v200_v9 = vmul.f32 0.0078125, %v153_v53  ;;  %v262_v16 = vmul.f32 %v2365_v31, %v2365_v31 }
  0xea   :  { %v2375_v33 = vsub.f32 %v1727_v37, %v199_v57  ;;  %305 = vadd.xlane.f32.xlu1 %v260_v32  ;;  %307 = vadd.xlane.f32.xlu0 %v261_v34 }
  0xeb   :  { %v2379_v35 = vsub.f32 %v1728_v38, %v200_v9  ;;  %v155_v59 = vpop.xlane.xlu0 %154 }
  0xec   :  { %v157_v26 = vpop.xlane.xlu1 %156  ;;  %v201_v60 = vmul.f32 0.0078125, %v155_v59  ;;  %v263_v61 = vmul.f32 %v2375_v33, %v2375_v33 }
  0xed   :  { %v202_v2 = vmul.f32 0.0078125, %v157_v26  ;;  %v264_v38 = vmul.f32 %v2379_v35, %v2379_v35 }
  0xee   :  { %v2390_v37 = vsub.f32 %v1731_v40, %v201_v60  ;;  %309 = vadd.xlane.f32.xlu1 %v262_v16  ;;  %311 = vadd.xlane.f32.xlu0 %v263_v61  ;;  %v2426_v60 = vshrl.u32 %v473_v45, 7 }
  0xef   :  { %v2394_v36 = vsub.f32 %v1732_v41, %v202_v2  ;;  %v159_v12 = vpop.xlane.xlu0 %158 }
  0xf0   :  { %v161_v3 = vpop.xlane.xlu1 %160  ;;  %v203_v48 = vmul.f32 0.0078125, %v159_v12  ;;  %v265_v20 = vmul.f32 %v2390_v37, %v2390_v37 }
  0xf1   :  { %v204_v29 = vmul.f32 0.0078125, %v161_v3  ;;  %v266_v41 = vmul.f32 %v2394_v36, %v2394_v36 }
  0xf2   :  { %v2402_v40 = vsub.f32 %v1735_v43, %v203_v48  ;;  %313 = vadd.xlane.f32.xlu1 %v264_v38  ;;  %315 = vadd.xlane.f32.xlu0 %v265_v20  ;;  %v471_v38 = vld [vmem:[%s2718_s1] sm:$0x1] }
  0xf3   :  { %v2406_v39 = vsub.f32 %v1736_v44, %v204_v29  ;;  %v163_v49 = vpop.xlane.xlu0 %162  ;;  %v472_v29 = vunpack.c.l.bf16 %v471_v38 }
  0xf4   :  { %v165_v50 = vpop.xlane.xlu1 %164  ;;  %v205_v51 = vmul.f32 0.0078125, %v163_v49  ;;  %v267_v4 = vmul.f32 %v2402_v40, %v2402_v40 }
  0xf5   :  { %v206_v13 = vmul.f32 0.0078125, %v165_v50  ;;  %v268_v44 = vmul.f32 %v2406_v39, %v2406_v39 }
  0xf6   :  { %v2414_v43 = vsub.f32 %v1739_v46, %v205_v51  ;;  %317 = vadd.xlane.f32.xlu1 %v266_v41  ;;  %319 = vadd.xlane.f32.xlu0 %v267_v4  ;;  %v2432_v41 = vsub.s32 0, %v2426_v60  ;;  %v509_v51 = vld [vmem:[%s2719_s2] sm:$0x1] }
  0xf7   :  { %v2418_v42 = vsub.f32 %v1740_v47, %v206_v13 }
  0xf8   :  { %v269_v14 = vmul.f32 %v2414_v43, %v2414_v43 }
  0xf9   :  { %v270_v52 = vmul.f32 %v2418_v42, %v2418_v42 }
  0xfa   :  { %321 = vadd.xlane.f32.xlu1 %v268_v44  ;;  %323 = vadd.xlane.f32.xlu0 %v269_v14 }
  0xfe   :  { %325 = vadd.xlane.f32.xlu1 %v270_v52 }
 0x14b   :  { %v280_v46 = vpop.xlane.xlu0 %279 }
 0x14c   :  { %v343_v32 = vmul.f32 0.0078125, %v280_v46 }
 0x14e   :  { %v375_v23 = vadd.f32 1e-05, %v343_v32  ;;  %v2439_v32 = vrot.slane %v472_v29, %v2432_v41 }
 0x14f   :  { %v282_v53 = vpop.xlane.xlu1 %281  ;;  %v328_v57 = vpop.xlane.xlu0 %327 }
 0x150   :  { %1900 = vrsqrt.f32 %v375_v23  ;;  %v344_v47 = vmul.f32 0.0078125, %v282_v53  ;;  %v367_v34 = vmul.f32 0.0078125, %v328_v57  ;;  %v510_v23 = vunpack.c.l.bf16 %v509_v51 }
 0x152   :  { %v376_v9 = vadd.f32 1e-05, %v344_v47  ;;  %v399_v16 = vadd.f32 1e-05, %v367_v34 }
 0x153   :  { %v330_v59 = vpop.xlane.xlu1 %329  ;;  %v284_v26 = vpop.xlane.xlu0 %283 }
 0x154   :  { %1902 = vrsqrt.f32 %v376_v9  ;;  %v368_v61 = vmul.f32 0.0078125, %v330_v59  ;;  %v345_v2 = vmul.f32 0.0078125, %v284_v26 }
 0x155   :  { %1904 = vrsqrt.f32 %v399_v16 }
 0x156   :  { %v400_v12 = vadd.f32 1e-05, %v368_v61  ;;  %v377_v3 = vadd.f32 1e-05, %v345_v2 }
 0x157   :  { %v286_v48 = vpop.xlane.xlu1 %285  ;;  %v332_v20 = vpop.xlane.xlu0 %331 }
 0x158   :  { %1906 = vrsqrt.f32 %v400_v12  ;;  %v346_v49 = vmul.f32 0.0078125, %v286_v48  ;;  %v369_v50 = vmul.f32 0.0078125, %v332_v20 }
 0x159   :  { %1908 = vrsqrt.f32 %v377_v3 }
 0x15a   :  { %v1901_v4 = vpop.eup %1900  ;;  %v378_v13 = vadd.f32 1e-05, %v346_v49  ;;  %v401_v44 = vadd.f32 1e-05, %v369_v50 }
 0x15b   :  { %v334_v14 = vpop.xlane.xlu1 %333  ;;  %v288_v52 = vpop.xlane.xlu0 %287  ;;  %v439_v46 = vmul.f32 %v1901_v4, %v2231_v55  ;;  %v2444_v55 = vrot.slane %v510_v23, %v2432_v41 }
 0x15c   :  { %1910 = vrsqrt.f32 %v378_v13  ;;  %v370_v53 = vmul.f32 0.0078125, %v334_v14  ;;  %v347_v57 = vmul.f32 0.0078125, %v288_v52 }
 0x15d   :  { %1912 = vrsqrt.f32 %v401_v44  ;;  %v477_v61 = vmul.f32 %v2439_v32, %v439_v46 }
 0x15e   :  { %v1903_v45 = vpop.eup %1902  ;;  %v402_v47 = vadd.f32 1e-05, %v370_v53  ;;  %v379_v34 = vadd.f32 1e-05, %v347_v57 }
 0x15f   :  { %v1905_v9 = vpop.eup %1904  ;;  %v290_v16 = vpop.xlane.xlu1 %289  ;;  %v440_v26 = vmul.f32 %v1903_v45, %v2241_v62  ;;  %v515_v62 = vadd.f32 %v2444_v55, %v477_v61 }
 0x160   :  { %v336_v59 = vpop.xlane.xlu0 %335  ;;  %1914 = vrsqrt.f32 %v402_v47  ;;  %v348_v2 = vmul.f32 0.0078125, %v290_v16  ;;  %v463_v12 = vmul.f32 %v1905_v9, %v2235_v56 }
 0x161   :  { %v371_v38 = vmul.f32 0.0078125, %v336_v59  ;;  %1916 = vrsqrt.f32 %v379_v34  ;;  %v478_v3 = vmul.f32 %v2439_v32, %v440_v26 }
 0x162   :  { %v1907_v48 = vpop.eup %1906  ;;  %v380_v20 = vadd.f32 1e-05, %v348_v2  ;;  %v501_v44 = vmul.f32 %v2439_v32, %v463_v12  ;;  %v1893_v12 = vld [vmem:[#allocation6 + $0x20] ss:$12 sps:$4 sm:$0xff]  }
 0x163   :  { %v403_v29 = vadd.f32 1e-05, %v371_v38  ;;  %v1909_v49 = vpop.eup %1908  ;;  %v338_v50 = vpop.xlane.xlu1 %337  ;;  %v516_v4 = vadd.f32 %v2444_v55, %v478_v3  ;;  %v464_v13 = vmul.f32 %v1907_v48, %v2245_v63 }
 0x164   :  { %v292_v51 = vpop.xlane.xlu0 %291  ;;  %1918 = vrsqrt.f32 %v380_v20  ;;  %v372_v14 = vmul.f32 0.0078125, %v338_v50  ;;  %v441_v23 = vmul.f32 %v1909_v49, %v2253_v0  ;;  %v539_v9 = vadd.f32 %v2444_v55, %v501_v44 }
 0x165   :  { %v349_v56 = vmul.f32 0.0078125, %v292_v51  ;;  %1920 = vrsqrt.f32 %v403_v29  ;;  %v2452_v52 = vpack.c.bf16 %v516_v4, %v515_v62  ;;  %v502_v46 = vmul.f32 %v2439_v32, %v464_v13 }
 0x166   :  { %v1911_v53 = vpop.eup %1910  ;;  %v404_v57 = vadd.f32 1e-05, %v372_v14  ;;  %v479_v26 = vmul.f32 %v2439_v32, %v441_v23 }
 0x167   :  { %v381_v45 = vadd.f32 1e-05, %v349_v56  ;;  %v1913_v47 = vpop.eup %1912  ;;  %v294_v34 = vpop.xlane.xlu1 %293  ;;  %818 = vmatmul.mubr.bf16.vlgmr.msra.gmra.mrb[0].mxu0 %v2452_v52  ;;  %v540_v16 = vadd.f32 %v2444_v55, %v502_v46  ;;  %v442_v59 = vmul.f32 %v1911_v53, %v2257_v1  ;;  %v1894_v56 = vld [vmem:[#allocation6 + $0x38] ss:$12 sps:$4 sm:$0xff]  }
 0x168   :  { %v340_v63 = vpop.xlane.xlu0 %339  ;;  %1922 = vrsqrt.f32 %v404_v57  ;;  %v350_v61 = vmul.f32 0.0078125, %v294_v34  ;;  %827 = vmatprep.mubr.bf16.mxu0 %v2042_v54  ;;  %v465_v0 = vmul.f32 %v1913_v47, %v2265_v8  ;;  %v517_v51 = vadd.f32 %v2444_v55, %v479_v26 }
 0x169   :  { %v373_v2 = vmul.f32 0.0078125, %v340_v63  ;;  %1924 = vrsqrt.f32 %v381_v45  ;;  %v2463_v38 = vpack.c.bf16 %v540_v16, %v539_v9  ;;  %v480_v3 = vmul.f32 %v2439_v32, %v442_v59 }
 0x16a   :  { %v1915_v48 = vpop.eup %1914  ;;  %v382_v20 = vadd.f32 1e-05, %v350_v61  ;;  %v503_v4 = vmul.f32 %v2439_v32, %v465_v0 }
 0x16b   :  { %v405_v29 = vadd.f32 1e-05, %v373_v2  ;;  %v1917_v49 = vpop.eup %1916  ;;  %v342_v1 = vpop.xlane.xlu1 %341  ;;  %938 = vmatmul.mubr.bf16.vlgmr.msra.gmra.mrb[0].mxu1 %v2463_v38  ;;  %v518_v62 = vadd.f32 %v2444_v55, %v480_v3  ;;  %v466_v8 = vmul.f32 %v1915_v48, %v2269_v6  ;;  %v1895_v2 = vld [vmem:[#allocation6 + $0x50] ss:$12 sps:$4 sm:$0xff]  }
 0x16c   :  { %v296_v50 = vpop.xlane.xlu0 %295  ;;  %1926 = vrsqrt.f32 %v382_v20  ;;  %v374_v13 = vmul.f32 0.0078125, %v342_v1  ;;  %1797 = vmatpush3.bf16.msra.mxu1 %v2383_v58  ;;  %947 = vmatprep.mubr.bf16.mxu1 %v2042_v54  ;;  %v443_v23 = vmul.f32 %v1917_v49, %v2277_v11  ;;  %v541_v34 = vadd.f32 %v2444_v55, %v503_v4 }
 0x16d   :  { %v351_v44 = vmul.f32 0.0078125, %v296_v50  ;;  %1928 = vrsqrt.f32 %v405_v29  ;;  %1798 = vmatprep.subr.bf16.mxu1 %v1893_v12  ;;  %v2473_v14 = vpack.c.bf16 %v518_v62, %v517_v51  ;;  %v504_v46 = vmul.f32 %v2439_v32, %v466_v8  ;;  %v1896_v8 = vld [vmem:[#allocation6 + $0x68] ss:$12 sps:$4 sm:$0xff]  }
 0x16e   :  { %v1919_v53 = vpop.eup %1918  ;;  %v406_v6 = vadd.f32 1e-05, %v374_v13  ;;  %v481_v16 = vmul.f32 %v2439_v32, %v443_v23 }
 0x16f   :  { %v383_v57 = vadd.f32 1e-05, %v351_v44  ;;  %v1921_v45 = vpop.eup %1920  ;;  %v298_v47 = vpop.xlane.xlu1 %297  ;;  %828 = vmatmul.mubr.bf16.gmra.mrb[4].mxu0 %v2473_v14  ;;  %v542_v63 = vadd.f32 %v2444_v55, %v504_v46  ;;  %v444_v9 = vmul.f32 %v1919_v53, %v2281_v7 }
 0x170   :  { %v300_v58 = vpop.xlane.xlu0 %299  ;;  %1930 = vrsqrt.f32 %v406_v6  ;;  %v352_v59 = vmul.f32 0.0078125, %v298_v47  ;;  %1799 = vmatpush3.bf16.msra.mxu1 %v1893_v12  ;;  %837 = vmatprep.mubr.bf16.mxu0 %v2042_v54  ;;  %v467_v26 = vmul.f32 %v1921_v45, %v2289_v5  ;;  %v519_v49 = vadd.f32 %v2444_v55, %v481_v16 }
 0x171   :  { %v353_v11 = vmul.f32 0.0078125, %v300_v58  ;;  %1932 = vrsqrt.f32 %v383_v57  ;;  %1800 = vmatprep.subr.bf16.mxu1 %v1894_v56  ;;  %v2484_v61 = vpack.c.bf16 %v542_v63, %v541_v34  ;;  %v482_v0 = vmul.f32 %v2439_v32, %v444_v9  ;;  %v1897_v63 = vld [vmem:[#allocation6 + $0x80] ss:$12 sps:$4 sm:$0xff]  }
 0x172   :  { %v1923_v3 = vpop.eup %1922  ;;  %v384_v48 = vadd.f32 1e-05, %v352_v59  ;;  %v505_v50 = vmul.f32 %v2439_v32, %v467_v26 }
 0x173   :  { %v385_v7 = vadd.f32 1e-05, %v353_v11  ;;  %v1925_v20 = vpop.eup %1924  ;;  %v302_v29 = vpop.xlane.xlu1 %301  ;;  %948 = vmatmul.mubr.bf16.gmra.mrb[4].mxu1 %v2484_v61  ;;  %v520_v1 = vadd.f32 %v2444_v55, %v482_v0  ;;  %v468_v5 = vmul.f32 %v1923_v3, %v2293_v10 }
 0x174   :  { %v304_v12 = vpop.xlane.xlu0 %303  ;;  %1934 = vrsqrt.f32 %v384_v48  ;;  %v354_v51 = vmul.f32 0.0078125, %v302_v29  ;;  %1801 = vmatpush3.bf16.msra.mxu1 %v1894_v56  ;;  %957 = vmatprep.mubr.bf16.mxu1 %v2042_v54  ;;  %v445_v13 = vmul.f32 %v1925_v20, %v2301_v15  ;;  %v543_v56 = vadd.f32 %v2444_v55, %v505_v50  ;;  %v1898_v29 = vld [vmem:[#allocation6 + $0x98] ss:$12 sps:$4 sm:$0xff]  }
 0x175   :  { %1936 = vrsqrt.f32 %v385_v7  ;;  %1802 = vmatprep.subr.bf16.mxu1 %v1895_v2  ;;  %v2493_v62 = vpack.c.bf16 %v520_v1, %v519_v49  ;;  %v506_v4 = vmul.f32 %v2439_v32, %v468_v5  ;;  %v355_v23 = vmul.f32 0.0078125, %v304_v12 }
 0x176   :  { %v1927_v44 = vpop.eup %1926  ;;  %v386_v46 = vadd.f32 1e-05, %v354_v51  ;;  %v483_v47 = vmul.f32 %v2439_v32, %v445_v13 }
 0x177   :  { %v1929_v10 = vpop.eup %1928  ;;  %v306_v53 = vpop.xlane.xlu1 %305  ;;  %838 = vmatmul.mubr.bf16.gmra.mrb[8].mxu0 %v2493_v62  ;;  %v544_v57 = vadd.f32 %v2444_v55, %v506_v4  ;;  %v446_v45 = vmul.f32 %v1927_v44, %v2305_v17  ;;  %v387_v59 = vadd.f32 1e-05, %v355_v23 }
 0x178   :  { %v308_v6 = vpop.xlane.xlu0 %307  ;;  %1938 = vrsqrt.f32 %v386_v46  ;;  %v356_v58 = vmul.f32 0.0078125, %v306_v53  ;;  %1803 = vmatpush3.bf16.msra.mxu1 %v1895_v2  ;;  %847 = vmatprep.mubr.bf16.mxu0 %v2042_v54  ;;  %v469_v15 = vmul.f32 %v1929_v10, %v2313_v18  ;;  %v521_v2 = vadd.f32 %v2444_v55, %v483_v47  ;;  %v1899_v53 = vld [vmem:[#allocation6 + $0xb0] ss:$12 sps:$4 sm:$0xff]  }
 0x179   :  { %1804 = vmatprep.subr.bf16.mxu1 %v1896_v8  ;;  %v2504_v34 = vpack.c.bf16 %v544_v57, %v543_v56  ;;  %v484_v9 = vmul.f32 %v2439_v32, %v446_v45  ;;  %v357_v5 = vmul.f32 0.0078125, %v308_v6 }
 0x17a   :  { %v1931_v16 = vpop.eup %1930  ;;  %v388_v11 = vadd.f32 1e-05, %v356_v58  ;;  %v507_v48 = vmul.f32 %v2439_v32, %v469_v15 }
 0x17b   :  { %v1933_v26 = vpop.eup %1932  ;;  %v310_v17 = vpop.xlane.xlu1 %309  ;;  %958 = vmatmul.mubr.bf16.gmra.mrb[8].mxu1 %v2504_v34  ;;  %v522_v3 = vadd.f32 %v2444_v55, %v484_v9  ;;  %v470_v18 = vmul.f32 %v1931_v16, %v2317_v19  ;;  %v389_v57 = vadd.f32 1e-05, %v357_v5 }
 0x17c   :  { %v312_v0 = vpop.xlane.xlu0 %311  ;;  %1940 = vrsqrt.f32 %v388_v11  ;;  %v358_v7 = vmul.f32 0.0078125, %v310_v17  ;;  %1805 = vmatpush3.bf16.msra.mxu1 %v1896_v8  ;;  %967 = vmatprep.mubr.bf16.mxu1 %v2042_v54  ;;  %v447_v49 = vmul.f32 %v1933_v26, %v2325_v21  ;;  %v545_v8 = vadd.f32 %v2444_v55, %v507_v48 }
 0x17d   :  { %1806 = vmatprep.subr.bf16.mxu1 %v1897_v63  ;;  %v2513_v20 = vpack.c.bf16 %v522_v3, %v521_v2  ;;  %v508_v12 = vmul.f32 %v2439_v32, %v470_v18  ;;  %1942 = vrsqrt.f32 %v387_v59  ;;  %v359_v45 = vmul.f32 0.0078125, %v312_v0 }
 0x17e   :  { %v1935_v1 = vpop.eup %1934  ;;  %v485_v44 = vmul.f32 %v2439_v32, %v447_v49  ;;  %v390_v46 = vadd.f32 1e-05, %v358_v7 }
 0x17f   :  { %v1937_v50 = vpop.eup %1936  ;;  %v314_v19 = vpop.xlane.xlu1 %313  ;;  %848 = vmatmul.mubr.bf16.gmra.mrb[12].mxu0 %v2513_v20  ;;  %v546_v4 = vadd.f32 %v2444_v55, %v508_v12  ;;  %v448_v13 = vmul.f32 %v1935_v1, %v2329_v22  ;;  %v391_v18 = vadd.f32 1e-05, %v359_v45 }
 0x180   :  { %v316_v51 = vpop.xlane.xlu0 %315  ;;  %v360_v23 = vmul.f32 0.0078125, %v314_v19  ;;  %1807 = vmatpush3.bf16.msra.mxu1 %v1897_v63  ;;  %857 = vmatprep.mubr.bf16.mxu0 %v2042_v54  ;;  %v449_v22 = vmul.f32 %v1937_v50, %v2337_v24  ;;  %v523_v9 = vadd.f32 %v2444_v55, %v485_v44  ;;  %1944 = vrsqrt.f32 %v390_v46 }
 0x181   :  { %v361_v21 = vmul.f32 0.0078125, %v316_v51  ;;  %1808 = vmatprep.subr.bf16.mxu1 %v1898_v29  ;;  %v2523_v10 = vpack.c.bf16 %v546_v4, %v545_v8  ;;  %v486_v6 = vmul.f32 %v2439_v32, %v448_v13 }
 0x182   :  { %v1939_v56 = vpop.eup %1938  ;;  %v392_v58 = vadd.f32 1e-05, %v360_v23  ;;  %v487_v7 = vmul.f32 %v2439_v32, %v449_v22 }
 0x183   :  { %v393_v47 = vadd.f32 1e-05, %v361_v21  ;;  %v318_v15 = vpop.xlane.xlu1 %317  ;;  %968 = vmatmul.mubr.bf16.gmra.mrb[12].mxu1 %v2523_v10  ;;  %v524_v16 = vadd.f32 %v2444_v55, %v486_v6  ;;  %v450_v59 = vmul.f32 %v1939_v56, %v2341_v25 }
 0x184   :  { %v320_v63 = vpop.xlane.xlu0 %319  ;;  %v362_v11 = vmul.f32 0.0078125, %v318_v15  ;;  %1809 = vmatpush3.bf16.msra.mxu1 %v1898_v29  ;;  %1812 = vmatprep.mubr.bf16.mxu1 %v2452_v52  ;;  %v525_v51 = vadd.f32 %v2444_v55, %v487_v7 }
 0x185   :  { %v363_v26 = vmul.f32 0.0078125, %v320_v63  ;;  %1946 = vrsqrt.f32 %v393_v47  ;;  %1810 = vmatprep.subr.bf16.mxu1 %v1899_v53  ;;  %v551_v24 = vpack.c.bf16 %v524_v16, %v523_v9  ;;  %v488_v17 = vmul.f32 %v2439_v32, %v450_v59 }
 0x186   :  { %v1941_v0 = vpop.eup %1940  ;;  %1948 = vrsqrt.f32 %v389_v57  ;;  %v394_v2 = vadd.f32 1e-05, %v362_v11 }
 0x187   :  { %v395_v3 = vadd.f32 1e-05, %v363_v26  ;;  %1950 = vrsqrt.f32 %v392_v58  ;;  %v322_v48 = vpop.xlane.xlu1 %321  ;;  %858 = vmatmul.mubr.bf16.gmra.mrb[16].mxu0 %v551_v24  ;;  %v1943_v29 = vpop.eup %1942  ;;  %v526_v49 = vadd.f32 %v2444_v55, %v488_v17  ;;  %v452_v1 = vmul.f32 %v1941_v0, %v2353_v28 }
 0x188   :  { %v324_v25 = vpop.xlane.xlu0 %323  ;;  %1952 = vrsqrt.f32 %v394_v2  ;;  %v364_v12 = vmul.f32 0.0078125, %v322_v48  ;;  %1811 = vmatpush3.bf16.msra.mxu1 %v1899_v53  ;;  %867 = vmatprep.mubr.bf16.mxu0 %v2042_v54  ;;  %v451_v8 = vmul.f32 %v1943_v29, %v2349_v27 }
 0x189   :  { %v365_v52 = vmul.f32 0.0078125, %v324_v25  ;;  %1954 = vrsqrt.f32 %v395_v3  ;;  %v552_v13 = vpack.c.bf16 %v526_v49, %v525_v51  ;;  %v490_v44 = vmul.f32 %v2439_v32, %v452_v1 }
 0x18a   :  { %v396_v5 = vadd.f32 1e-05, %v364_v12  ;;  %1956 = vrsqrt.f32 %v391_v18  ;;  %v1945_v46 = vpop.eup %1944  ;;  %v489_v21 = vmul.f32 %v2439_v32, %v451_v8  ;;  %v636_v51 = vsub.s32 2, %v2426_v60 }
 0x18b   :  { %v397_v50 = vadd.f32 1e-05, %v365_v52  ;;  %v326_v19 = vpop.xlane.xlu1 %325  ;;  %1813 = vmatmul.mubr.bf16.vlgmr.msra.gmra.mrb[16].mxu1 %v2473_v14  ;;  %v528_v6 = vadd.f32 %v2444_v55, %v490_v44 }
 0x18c   :  { %1958 = vrsqrt.f32 %v396_v5  ;;  %v366_v4 = vmul.f32 0.0078125, %v326_v19  ;;  %1816 = vmatprep.mubr.bf16.mxu1 %v2493_v62  ;;  %v454_v62 = vmul.f32 %v1945_v46, %v2365_v31  ;;  %v527_v47 = vadd.f32 %v2444_v55, %v489_v21 }
 0x18d   :  { %1960 = vrsqrt.f32 %v397_v50 }
 0x18e   :  { %v398_v28 = vadd.f32 1e-05, %v366_v4  ;;  %v553_v9 = vpack.c.bf16 %v528_v6, %v527_v47  ;;  %v492_v31 = vmul.f32 %v2439_v32, %v454_v62 }
 0x18f   :  { %v1947_v23 = vpop.eup %1946  ;;  %868 = vmatmul.mubr.bf16.gmra.mrb[20].mxu0 %v552_v13 }
 0x190   :  { %v1949_v53 = vpop.eup %1948  ;;  %1962 = vrsqrt.f32 %v398_v28  ;;  %877 = vmatprep.mubr.bf16.mxu0 %v2042_v54  ;;  %v457_v27 = vmul.f32 %v1947_v23, %v2390_v37 }
 0x191   :  { %v1951_v14 = vpop.eup %1950  ;;  %v453_v22 = vmul.f32 %v1949_v53, %v2361_v30 }
 0x192   :  { %v1953_v56 = vpop.eup %1952  ;;  %v495_v57 = vmul.f32 %v2439_v32, %v457_v27 }
 0x193   :  { %v1955_v45 = vpop.eup %1954  ;;  %1817 = vmatmul.mubr.bf16.gmra.mrb[20].mxu1 %v2513_v20  ;;  %v458_v58 = vmul.f32 %v1953_v56, %v2394_v36  ;;  %v456_v20 = vmul.f32 %v1951_v14, %v2379_v35  ;;  %v491_v30 = vmul.f32 %v2439_v32, %v453_v22  ;;  %v530_v35 = vadd.f32 %v2444_v55, %v492_v31 }
 0x194   :  { %1820 = vmatprep.mubr.bf16.mxu1 %v551_v24  ;;  %v533_v37 = vadd.f32 %v2444_v55, %v495_v57  ;;  %v459_v15 = vmul.f32 %v1955_v45, %v2402_v40  ;;  %v1957_v63 = vpop.eup %1956 }
 0x195   :  { %v496_v16 = vmul.f32 %v2439_v32, %v458_v58  ;;  %v455_v40 = vmul.f32 %v1957_v63, %v2375_v33  ;;  %v494_v48 = vmul.f32 %v2439_v32, %v456_v20 }
 0x196   :  { %v1959_v59 = vpop.eup %1958  ;;  %v497_v11 = vmul.f32 %v2439_v32, %v459_v15 }
 0x197   :  { %v1961_v26 = vpop.eup %1960  ;;  %878 = vmatmul.mubr.bf16.gmra.mrb[24].mxu0 %v553_v9  ;;  %v534_v36 = vadd.f32 %v2444_v55, %v496_v16  ;;  %v460_v24 = vmul.f32 %v1959_v59, %v2406_v39  ;;  %v529_v39 = vadd.f32 %v2444_v55, %v491_v30  ;;  %v532_v1 = vadd.f32 %v2444_v55, %v494_v48 }
 0x198   :  { %887 = vmatprep.mubr.bf16.mxu0 %v2042_v54  ;;  %v535_v17 = vadd.f32 %v2444_v55, %v497_v11  ;;  %v461_v0 = vmul.f32 %v1961_v26, %v2414_v43  ;;  %v493_v43 = vmul.f32 %v2439_v32, %v455_v40 }
 0x199   :  { %v556_v2 = vpack.c.bf16 %v534_v36, %v533_v37  ;;  %v498_v3 = vmul.f32 %v2439_v32, %v460_v24  ;;  %v554_v12 = vpack.c.bf16 %v530_v35, %v529_v39 }
 0x19a   :  { %v1963_v18 = vpop.eup %1962  ;;  %v499_v25 = vmul.f32 %v2439_v32, %v461_v0  ;;  %v531_v50 = vadd.f32 %v2444_v55, %v493_v43 }
 0x19b   :  { %1821 = vmatmul.mubr.bf16.gmra.mrb[24].mxu1 %v552_v13  ;;  %v536_v7 = vadd.f32 %v2444_v55, %v498_v3  ;;  %v462_v33 = vmul.f32 %v1963_v18, %v2418_v42 }
 0x19c   :  { %1824 = vmatprep.mubr.bf16.mxu1 %v553_v9  ;;  %v537_v29 = vadd.f32 %v2444_v55, %v499_v25  ;;  %v555_v42 = vpack.c.bf16 %v532_v1, %v531_v50 }
 0x19d   :  { %v557_v52 = vpack.c.bf16 %v536_v7, %v535_v17  ;;  %v500_v49 = vmul.f32 %v2439_v32, %v462_v33  ;;  %v627_v32 = vld [vmem:[%s2721_s4] sm:$0x7]  ;;  %s2043_s4 = smov [#allocation8]  }
 0x19e   :  { %s1528_s23 = sshll.u32 %s2043_s4, 4  ;;  %s1529_s23 = int_to_ptr.vmem [resolvable:$true] %s1528_s23 }
 0x19f   :  { %888 = vmatmul.mubr.bf16.gmra.mrb[28].mxu0 %v554_v12  ;;  %v538_v5 = vadd.f32 %v2444_v55, %v500_v49  ;;  %v2589_v55 = vunpack.c.l.bf16 %v627_v32  ;;  %s2008_s24 = scalar_lea.vmem %s1529_s23, 6144  ;;  %p2013_p3 = scmp.lt.s32.totalorder %s1529_s23, %s1529_s23 }
 0x1a0   :  { %897 = vmatprep.mubr.bf16.mxu0 %v2042_v54  ;;  %p2009_p2 = scmp.ne.s32.totalorder %s1529_s23, %s2008_s24  ;;  %p2014_p4 = scmp.lt.s32.totalorder %s2008_s24, %s2008_s24 }
 0x1a1   :  { %v558_v19 = vpack.c.bf16 %v538_v5, %v537_v29 }
 0x1a2   :  { %p2015_p5 = por %p2014_p4, %p2013_p3 }
 0x1a3   :  { %1825 = vmatmul.mubr.bf16.gmra.mrb[28].mxu1 %v554_v12 }
 0x1a4   :  { %1828 = vmatprep.mubr.bf16.mxu1 %v555_v42  ;;  %p2016_p6 = pnand %p2015_p5, %p2009_p2 }
 0x1a7   :  { %898 = vmatmul.mubr.bf16.gmra.mrb[32].mxu0 %v555_v42 }
 0x1a8   :  { %907 = vmatprep.mubr.bf16.mxu0 %v2042_v54 }
 0x1ab   :  { %1829 = vmatmul.mubr.bf16.gmra.mrb[32].mxu1 %v556_v2 }
 0x1ac   :  { %1832 = vmatprep.mubr.bf16.mxu1 %v557_v52 }
 0x1af   :  { %908 = vmatmul.mubr.bf16.gmra.mrb[36].mxu0 %v556_v2 }
 0x1b0   :  { %917 = vmatprep.mubr.bf16.mxu0 %v2042_v54 }
 0x1b3   :  { %1833 = vmatmul.mubr.bf16.gmra.mrb[36].mxu1 %v558_v19 }
 0x1b4   :  { %1836 = vmatprep.mubr.bf16.mxu1 %v2463_v38  ;;  %v633_v38 = vrot.slane %v2589_v55, %v2432_v41 }
 0x1b7   :  { %918 = vmatmul.mubr.bf16.gmra.mrb[40].mxu0 %v557_v52 }
 0x1b8   :  { %927 = vmatprep.mubr.bf16.mxu0 %v2042_v54  ;;  %v637_v54 = vrot.slane %v2589_v55, %v636_v51 }
 0x1bb   :  { %1837 = vmatmul.mubr.bf16.gmra.mrb[40].mxu1 %v2484_v61  ;;  %v2596_v61 = vrot.slane %v633_v38, %v2432_v41 }
 0x1bc   :  { %1840 = vmatprep.mubr.bf16.mxu1 %v2504_v34  ;;  %v2599_v34 = vrot.slane %v637_v54, %v2432_v41 }
 0x1bf   :  { %928 = vmatmul.mubr.bf16.gmra.mrb[44].mxu0 %v558_v19 }
 0x1c3   :  { %1841 = vmatmul.mubr.bf16.gmra.mrb[44].mxu1 %v2523_v10 }
 0x23a   :  { %v819_v10 = vpop.f32.mrb[0].mxu0 }
 0x23b   :  { %v820_v8 = vadd.f32 %v819_v10, %v2596_v61  ;;  %v821_v4 = vpop.f32.mrb[1].mxu0 }
 0x23c   :  { %v822_v13 = vadd.f32 %v821_v4, %v2599_v34  ;;  %v823_v44 = vpop.f32.mrb[2].mxu0 }
 0x23d   :  { %v824_v46 = vadd.f32 %v823_v44, %v2596_v61  ;;  %v825_v28 = vpop.f32.mrb[3].mxu0 }
 0x23e   :  { %v1629_v23 = vpack.c.bf16 %v822_v13, %v820_v8  ;;  %v826_v21 = vadd.f32 %v825_v28, %v2599_v34  ;;  %v939_v53 = vpop.f32.mrb[0].mxu1  ;;  %v640_v8 = vsub.s32 4, %v2426_v60 }
 0x23f   :  { %v940_v27 = vadd.f32 %v939_v53, %v2596_v61  ;;  %v941_v14 = vpop.f32.mrb[1].mxu1 }
 0x240   :  { %1459 = vst [vmem:[#allocation8] sm:$0xff] %v1629_v23  ;;  %v1631_v6 = vpack.c.bf16 %v826_v21, %v824_v46  ;;  %v942_v62 = vadd.f32 %v941_v14, %v2599_v34  ;;  %v943_v56 = vpop.f32.mrb[2].mxu1 }
 0x241   :  { %v944_v57 = vadd.f32 %v943_v56, %v2596_v61  ;;  %v945_v45 = vpop.f32.mrb[3].mxu1 }
 0x242   :  { %1461 = vst [vmem:[#allocation8 + $0xc] sm:$0xff] %v1631_v6  ;;  %v1677_v47 = vpack.c.bf16 %v942_v62, %v940_v27  ;;  %v946_v22 = vadd.f32 %v945_v45, %v2599_v34  ;;  %v829_v58 = vpop.f32.mrb[4].mxu0  ;;  %v641_v6 = vrot.slane %v2589_v55, %v640_v8 }
 0x243   :  { %v830_v37 = vadd.f32 %v829_v58, %v2596_v61  ;;  %v831_v15 = vpop.f32.mrb[5].mxu0 }
 0x244   :  { %1507 = vst [vmem:[#allocation8 + $0x120] sm:$0xff] %v1677_v47  ;;  %v1679_v63 = vpack.c.bf16 %v946_v22, %v944_v57  ;;  %v832_v9 = vadd.f32 %v831_v15, %v2599_v34  ;;  %v833_v31 = vpop.f32.mrb[6].mxu0  ;;  %v2637_v55 = vrot.slane %v641_v6, %v2432_v41 }
 0x245   :  { %v834_v16 = vadd.f32 %v833_v31, %v2596_v61  ;;  %v835_v59 = vpop.f32.mrb[7].mxu0 }
 0x246   :  { %1509 = vst [vmem:[#allocation8 + $0x12c] sm:$0xff] %v1679_v63  ;;  %v1633_v20 = vpack.c.bf16 %v832_v9, %v830_v37  ;;  %v836_v11 = vadd.f32 %v835_v59, %v2599_v34  ;;  %v949_v26 = vpop.f32.mrb[4].mxu1 }
 0x247   :  { %v950_v30 = vadd.f32 %v949_v26, %v2596_v61  ;;  %v951_v36 = vpop.f32.mrb[5].mxu1 }
 0x248   :  { %1463 = vst [vmem:[#allocation8 + $0x18] sm:$0xff] %v1633_v20  ;;  %v1635_v24 = vpack.c.bf16 %v836_v11, %v834_v16  ;;  %v952_v40 = vadd.f32 %v951_v36, %v2599_v34  ;;  %v953_v17 = vpop.f32.mrb[6].mxu1 }
 0x249   :  { %v954_v0 = vadd.f32 %v953_v17, %v2596_v61  ;;  %v955_v35 = vpop.f32.mrb[7].mxu1 }
 0x24a   :  { %1465 = vst [vmem:[#allocation8 + $0x24] sm:$0xff] %v1635_v24  ;;  %v1681_v2 = vpack.c.bf16 %v952_v40, %v950_v30  ;;  %v956_v3 = vadd.f32 %v955_v35, %v2599_v34  ;;  %v839_v18 = vpop.f32.mrb[8].mxu0 }
 0x24b   :  { %v840_v48 = vadd.f32 %v839_v18, %v2596_v61  ;;  %v841_v25 = vpop.f32.mrb[9].mxu0 }
 0x24c   :  { %1511 = vst [vmem:[#allocation8 + $0x138] sm:$0xff] %v1681_v2  ;;  %v1683_v39 = vpack.c.bf16 %v956_v3, %v954_v0  ;;  %v842_v7 = vadd.f32 %v841_v25, %v2599_v34  ;;  %v843_v33 = vpop.f32.mrb[10].mxu0 }
 0x24d   :  { %v844_v43 = vadd.f32 %v843_v33, %v2596_v61  ;;  %v845_v29 = vpop.f32.mrb[11].mxu0 }
 0x24e   :  { %1513 = vst [vmem:[#allocation8 + $0x144] sm:$0xff] %v1683_v39  ;;  %v1637_v12 = vpack.c.bf16 %v842_v7, %v840_v48  ;;  %v846_v52 = vadd.f32 %v845_v29, %v2599_v34  ;;  %v959_v49 = vpop.f32.mrb[8].mxu1 }
 0x24f   :  { %v960_v1 = vadd.f32 %v959_v49, %v2596_v61  ;;  %v961_v5 = vpop.f32.mrb[9].mxu1 }
 0x250   :  { %1467 = vst [vmem:[#allocation8 + $0x30] sm:$0xff] %v1637_v12  ;;  %v1639_v50 = vpack.c.bf16 %v846_v52, %v844_v43  ;;  %v962_v19 = vadd.f32 %v961_v5, %v2599_v34  ;;  %v963_v42 = vpop.f32.mrb[10].mxu1 }
 0x251   :  { %v964_v32 = vadd.f32 %v963_v42, %v2596_v61  ;;  %v965_v51 = vpop.f32.mrb[11].mxu1 }
 0x252   :  { %1469 = vst [vmem:[#allocation8 + $0x3c] sm:$0xff] %v1639_v50  ;;  %v1685_v38 = vpack.c.bf16 %v962_v19, %v960_v1  ;;  %v966_v54 = vadd.f32 %v965_v51, %v2599_v34  ;;  %v849_v10 = vpop.f32.mrb[12].mxu0 }
 0x253   :  { %v850_v4 = vadd.f32 %v849_v10, %v2596_v61  ;;  %v851_v13 = vpop.f32.mrb[13].mxu0 }
 0x254   :  { %1515 = vst [vmem:[#allocation8 + $0x150] sm:$0xff] %v1685_v38  ;;  %v1687_v44 = vpack.c.bf16 %v966_v54, %v964_v32  ;;  %v852_v46 = vadd.f32 %v851_v13, %v2599_v34  ;;  %v853_v28 = vpop.f32.mrb[14].mxu0 }
 0x255   :  { %v854_v23 = vadd.f32 %v853_v28, %v2596_v61  ;;  %v855_v21 = vpop.f32.mrb[15].mxu0 }
 0x256   :  { %1517 = vst [vmem:[#allocation8 + $0x15c] sm:$0xff] %v1687_v44  ;;  %v1641_v53 = vpack.c.bf16 %v852_v46, %v850_v4  ;;  %v856_v27 = vadd.f32 %v855_v21, %v2599_v34  ;;  %v969_v14 = vpop.f32.mrb[12].mxu1 }
 0x257   :  { %v970_v60 = vadd.f32 %v969_v14, %v2596_v61  ;;  %v971_v62 = vpop.f32.mrb[13].mxu1 }
 0x258   :  { %1471 = vst [vmem:[#allocation8 + $0x48] sm:$0xff] %v1641_v53  ;;  %v1643_v56 = vpack.c.bf16 %v856_v27, %v854_v23  ;;  %v972_v57 = vadd.f32 %v971_v62, %v2599_v34  ;;  %v973_v45 = vpop.f32.mrb[14].mxu1 }
 0x259   :  { %v974_v47 = vadd.f32 %v973_v45, %v2596_v61  ;;  %v975_v22 = vpop.f32.mrb[15].mxu1 }
 0x25a   :  { %1473 = vst [vmem:[#allocation8 + $0x54] sm:$0xff] %v1643_v56  ;;  %v1689_v58 = vpack.c.bf16 %v972_v57, %v970_v60  ;;  %v976_v37 = vadd.f32 %v975_v22, %v2599_v34  ;;  %v859_v15 = vpop.f32.mrb[16].mxu0 }
 0x25b   :  { %v860_v63 = vadd.f32 %v859_v15, %v2596_v61  ;;  %v861_v9 = vpop.f32.mrb[17].mxu0 }
 0x25c   :  { %1519 = vst [vmem:[#allocation8 + $0x168] sm:$0xff] %v1689_v58  ;;  %v1691_v31 = vpack.c.bf16 %v976_v37, %v974_v47  ;;  %v862_v16 = vadd.f32 %v861_v9, %v2599_v34  ;;  %v863_v59 = vpop.f32.mrb[18].mxu0 }
 0x25d   :  { %v864_v20 = vadd.f32 %v863_v59, %v2596_v61  ;;  %v865_v11 = vpop.f32.mrb[19].mxu0 }
 0x25e   :  { %1521 = vst [vmem:[#allocation8 + $0x174] sm:$0xff] %v1691_v31  ;;  %v1645_v26 = vpack.c.bf16 %v862_v16, %v860_v63  ;;  %v866_v30 = vadd.f32 %v865_v11, %v2599_v34  ;;  %v1814_v36 = vpop.f32.mrb[16].mxu1 }
 0x25f   :  { %v1021_v24 = vadd.f32 %v1814_v36, %v2637_v55  ;;  %v1012_v40 = vpop.f32.mrb[17].mxu1 }
 0x260   :  { %1475 = vst [vmem:[#allocation8 + $0x60] sm:$0xff] %v1645_v26  ;;  %v1647_v17 = vpack.c.bf16 %v866_v30, %v864_v20  ;;  %v1013_v41 = vadd.f32 %v1012_v40, %v2637_v55  ;;  %v1815_v0 = vpop.f32.mrb[18].mxu1 }
 0x261   :  { %v1634_v35 = vpack.c.bf16 %v1021_v24, %v1021_v24  ;;  %v1024_v2 = vadd.f32 %v1815_v0, %v2637_v55  ;;  %v1015_v3 = vpop.f32.mrb[19].mxu1 }
 0x262   :  { %1477 = vst [vmem:[#allocation8 + $0x6c] sm:$0xff] %v1647_v17  ;;  %v1630_v18 = vpack.c.bf16 %v1013_v41, %v1013_v41  ;;  %v1016_v48 = vadd.f32 %v1015_v3, %v2637_v55  ;;  %v869_v25 = vpop.f32.mrb[20].mxu0 }
 0x263   :  { %1464 = vst [vmem:[#allocation8 + $0x20] sm:$0xf] %v1634_v35  ;;  %v1636_v39 = vpack.c.bf16 %v1024_v2, %v1024_v2  ;;  %v870_v7 = vadd.f32 %v869_v25, %v2596_v61  ;;  %v871_v33 = vpop.f32.mrb[21].mxu0 }
 0x264   :  { %1460 = vst [vmem:[#allocation8 + $0x8] sm:$0xf] %v1630_v18  ;;  %v1632_v43 = vpack.c.bf16 %v1016_v48, %v1016_v48  ;;  %v872_v29 = vadd.f32 %v871_v33, %v2599_v34  ;;  %v873_v12 = vpop.f32.mrb[22].mxu0 }
 0x265   :  { %1466 = vst [vmem:[#allocation8 + $0x2c] sm:$0xf] %v1636_v39  ;;  %v874_v52 = vadd.f32 %v873_v12, %v2596_v61  ;;  %v875_v49 = vpop.f32.mrb[23].mxu0 }
 0x266   :  { %1462 = vst [vmem:[#allocation8 + $0x14] sm:$0xf] %v1632_v43  ;;  %v1649_v1 = vpack.c.bf16 %v872_v29, %v870_v7  ;;  %v876_v5 = vadd.f32 %v875_v49, %v2599_v34  ;;  %v1818_v50 = vpop.f32.mrb[20].mxu1 }
 0x267   :  { %v1037_v19 = vadd.f32 %v1818_v50, %v2637_v55  ;;  %v1028_v42 = vpop.f32.mrb[21].mxu1 }
 0x268   :  { %1479 = vst [vmem:[#allocation8 + $0x78] sm:$0xff] %v1649_v1  ;;  %v1651_v32 = vpack.c.bf16 %v876_v5, %v874_v52  ;;  %v1029_v51 = vadd.f32 %v1028_v42, %v2637_v55  ;;  %v1819_v38 = vpop.f32.mrb[22].mxu1 }
 0x269   :  { %v1642_v54 = vpack.c.bf16 %v1037_v19, %v1037_v19  ;;  %v1040_v10 = vadd.f32 %v1819_v38, %v2637_v55  ;;  %v1031_v8 = vpop.f32.mrb[23].mxu1 }
 0x26a   :  { %1481 = vst [vmem:[#allocation8 + $0x84] sm:$0xff] %v1651_v32  ;;  %v1638_v4 = vpack.c.bf16 %v1029_v51, %v1029_v51  ;;  %v1032_v13 = vadd.f32 %v1031_v8, %v2637_v55  ;;  %v879_v44 = vpop.f32.mrb[24].mxu0 }
 0x26b   :  { %1472 = vst [vmem:[#allocation8 + $0x50] sm:$0xf] %v1642_v54  ;;  %v1644_v46 = vpack.c.bf16 %v1040_v10, %v1040_v10  ;;  %v880_v28 = vadd.f32 %v879_v44, %v2596_v61  ;;  %v881_v23 = vpop.f32.mrb[25].mxu0 }
 0x26c   :  { %1468 = vst [vmem:[#allocation8 + $0x38] sm:$0xf] %v1638_v4  ;;  %v1640_v21 = vpack.c.bf16 %v1032_v13, %v1032_v13  ;;  %v882_v53 = vadd.f32 %v881_v23, %v2599_v34  ;;  %v883_v27 = vpop.f32.mrb[26].mxu0 }
 0x26d   :  { %1474 = vst [vmem:[#allocation8 + $0x5c] sm:$0xf] %v1644_v46  ;;  %v884_v14 = vadd.f32 %v883_v27, %v2596_v61  ;;  %v885_v6 = vpop.f32.mrb[27].mxu0 }
 0x26e   :  { %1470 = vst [vmem:[#allocation8 + $0x44] sm:$0xf] %v1640_v21  ;;  %v1653_v60 = vpack.c.bf16 %v882_v53, %v880_v28  ;;  %v886_v62 = vadd.f32 %v885_v6, %v2599_v34  ;;  %v1822_v56 = vpop.f32.mrb[24].mxu1 }
 0x26f   :  { %v1053_v57 = vadd.f32 %v1822_v56, %v2637_v55  ;;  %v1044_v45 = vpop.f32.mrb[25].mxu1 }
 0x270   :  { %1483 = vst [vmem:[#allocation8 + $0x90] sm:$0xff] %v1653_v60  ;;  %v1655_v47 = vpack.c.bf16 %v886_v62, %v884_v14  ;;  %v1045_v22 = vadd.f32 %v1044_v45, %v2637_v55  ;;  %v1823_v58 = vpop.f32.mrb[26].mxu1 }
 0x271   :  { %v1650_v37 = vpack.c.bf16 %v1053_v57, %v1053_v57  ;;  %v1056_v15 = vadd.f32 %v1823_v58, %v2637_v55  ;;  %v1047_v63 = vpop.f32.mrb[27].mxu1 }
 0x272   :  { %1485 = vst [vmem:[#allocation8 + $0x9c] sm:$0xff] %v1655_v47  ;;  %v1646_v9 = vpack.c.bf16 %v1045_v22, %v1045_v22  ;;  %v1048_v31 = vadd.f32 %v1047_v63, %v2637_v55  ;;  %v889_v16 = vpop.f32.mrb[28].mxu0 }
 0x273   :  { %1480 = vst [vmem:[#allocation8 + $0x80] sm:$0xf] %v1650_v37  ;;  %v1652_v59 = vpack.c.bf16 %v1056_v15, %v1056_v15  ;;  %v890_v20 = vadd.f32 %v889_v16, %v2596_v61  ;;  %v891_v11 = vpop.f32.mrb[29].mxu0 }
 0x274   :  { %1476 = vst [vmem:[#allocation8 + $0x68] sm:$0xf] %v1646_v9  ;;  %v1648_v26 = vpack.c.bf16 %v1048_v31, %v1048_v31  ;;  %v892_v30 = vadd.f32 %v891_v11, %v2599_v34  ;;  %v893_v36 = vpop.f32.mrb[30].mxu0 }
 0x275   :  { %1482 = vst [vmem:[#allocation8 + $0x8c] sm:$0xf] %v1652_v59  ;;  %v894_v24 = vadd.f32 %v893_v36, %v2596_v61  ;;  %v895_v40 = vpop.f32.mrb[31].mxu0 }
 0x276   :  { %1478 = vst [vmem:[#allocation8 + $0x74] sm:$0xf] %v1648_v26  ;;  %v1657_v17 = vpack.c.bf16 %v892_v30, %v890_v20  ;;  %v896_v41 = vadd.f32 %v895_v40, %v2599_v34  ;;  %v1826_v0 = vpop.f32.mrb[28].mxu1 }
 0x277   :  { %v1069_v35 = vadd.f32 %v1826_v0, %v2637_v55  ;;  %v1060_v2 = vpop.f32.mrb[29].mxu1 }
 0x278   :  { %1487 = vst [vmem:[#allocation8 + $0xa8] sm:$0xff] %v1657_v17  ;;  %v1659_v3 = vpack.c.bf16 %v896_v41, %v894_v24  ;;  %v1061_v18 = vadd.f32 %v1060_v2, %v2637_v55  ;;  %v1827_v48 = vpop.f32.mrb[30].mxu1 }
 0x279   :  { %v1658_v25 = vpack.c.bf16 %v1069_v35, %v1069_v35  ;;  %v1072_v39 = vadd.f32 %v1827_v48, %v2637_v55  ;;  %v1063_v7 = vpop.f32.mrb[31].mxu1 }
 0x27a   :  { %1489 = vst [vmem:[#allocation8 + $0xb4] sm:$0xff] %v1659_v3  ;;  %v1654_v33 = vpack.c.bf16 %v1061_v18, %v1061_v18  ;;  %v1064_v43 = vadd.f32 %v1063_v7, %v2637_v55  ;;  %v899_v29 = vpop.f32.mrb[32].mxu0 }
 0x27b   :  { %1488 = vst [vmem:[#allocation8 + $0xb0] sm:$0xf] %v1658_v25  ;;  %v1660_v12 = vpack.c.bf16 %v1072_v39, %v1072_v39  ;;  %v900_v52 = vadd.f32 %v899_v29, %v2596_v61  ;;  %v901_v49 = vpop.f32.mrb[33].mxu0 }
 0x27c   :  { %1484 = vst [vmem:[#allocation8 + $0x98] sm:$0xf] %v1654_v33  ;;  %v1656_v1 = vpack.c.bf16 %v1064_v43, %v1064_v43  ;;  %v902_v5 = vadd.f32 %v901_v49, %v2599_v34  ;;  %v903_v50 = vpop.f32.mrb[34].mxu0 }
 0x27d   :  { %1490 = vst [vmem:[#allocation8 + $0xbc] sm:$0xf] %v1660_v12  ;;  %v904_v19 = vadd.f32 %v903_v50, %v2596_v61  ;;  %v905_v42 = vpop.f32.mrb[35].mxu0 }
 0x27e   :  { %1486 = vst [vmem:[#allocation8 + $0xa4] sm:$0xf] %v1656_v1  ;;  %v1661_v32 = vpack.c.bf16 %v902_v5, %v900_v52  ;;  %v906_v51 = vadd.f32 %v905_v42, %v2599_v34  ;;  %v1830_v38 = vpop.f32.mrb[32].mxu1 }
 0x27f   :  { %v1085_v54 = vadd.f32 %v1830_v38, %v2637_v55  ;;  %v1076_v10 = vpop.f32.mrb[33].mxu1 }
 0x280   :  { %1491 = vst [vmem:[#allocation8 + $0xc0] sm:$0xff] %v1661_v32  ;;  %v1663_v8 = vpack.c.bf16 %v906_v51, %v904_v19  ;;  %v1077_v4 = vadd.f32 %v1076_v10, %v2637_v55  ;;  %v1831_v13 = vpop.f32.mrb[34].mxu1 }
 0x281   :  { %v1666_v44 = vpack.c.bf16 %v1085_v54, %v1085_v54  ;;  %v1088_v46 = vadd.f32 %v1831_v13, %v2637_v55  ;;  %v1079_v28 = vpop.f32.mrb[35].mxu1 }
 0x282   :  { %1493 = vst [vmem:[#allocation8 + $0xcc] sm:$0xff] %v1663_v8  ;;  %v1662_v23 = vpack.c.bf16 %v1077_v4, %v1077_v4  ;;  %v1080_v21 = vadd.f32 %v1079_v28, %v2637_v55  ;;  %v909_v53 = vpop.f32.mrb[36].mxu0 }
 0x283   :  { %1496 = vst [vmem:[#allocation8 + $0xe0] sm:$0xf] %v1666_v44  ;;  %v1668_v27 = vpack.c.bf16 %v1088_v46, %v1088_v46  ;;  %v910_v14 = vadd.f32 %v909_v53, %v2596_v61  ;;  %v911_v6 = vpop.f32.mrb[37].mxu0 }
 0x284   :  { %1492 = vst [vmem:[#allocation8 + $0xc8] sm:$0xf] %v1662_v23  ;;  %v1664_v60 = vpack.c.bf16 %v1080_v21, %v1080_v21  ;;  %v912_v62 = vadd.f32 %v911_v6, %v2599_v34  ;;  %v913_v56 = vpop.f32.mrb[38].mxu0 }
 0x285   :  { %1498 = vst [vmem:[#allocation8 + $0xec] sm:$0xf] %v1668_v27  ;;  %v914_v57 = vadd.f32 %v913_v56, %v2596_v61  ;;  %v915_v45 = vpop.f32.mrb[39].mxu0 }
 0x286   :  { %1494 = vst [vmem:[#allocation8 + $0xd4] sm:$0xf] %v1664_v60  ;;  %v1665_v47 = vpack.c.bf16 %v912_v62, %v910_v14  ;;  %v916_v22 = vadd.f32 %v915_v45, %v2599_v34  ;;  %v1834_v58 = vpop.f32.mrb[36].mxu1 }
 0x287   :  { %v1101_v37 = vadd.f32 %v1834_v58, %v2637_v55  ;;  %v1092_v15 = vpop.f32.mrb[37].mxu1 }
 0x288   :  { %1495 = vst [vmem:[#allocation8 + $0xd8] sm:$0xff] %v1665_v47  ;;  %v1667_v63 = vpack.c.bf16 %v916_v22, %v914_v57  ;;  %v1093_v9 = vadd.f32 %v1092_v15, %v2637_v55  ;;  %v1835_v31 = vpop.f32.mrb[38].mxu1 }
 0x289   :  { %v1674_v16 = vpack.c.bf16 %v1101_v37, %v1101_v37  ;;  %v1104_v59 = vadd.f32 %v1835_v31, %v2637_v55  ;;  %v1095_v20 = vpop.f32.mrb[39].mxu1 }
 0x28a   :  { %1497 = vst [vmem:[#allocation8 + $0xe4] sm:$0xff] %v1667_v63  ;;  %v1670_v11 = vpack.c.bf16 %v1093_v9, %v1093_v9  ;;  %v1096_v26 = vadd.f32 %v1095_v20, %v2637_v55  ;;  %v919_v30 = vpop.f32.mrb[40].mxu0 }
 0x28b   :  { %1504 = vst [vmem:[#allocation8 + $0x110] sm:$0xf] %v1674_v16  ;;  %v1676_v36 = vpack.c.bf16 %v1104_v59, %v1104_v59  ;;  %v920_v24 = vadd.f32 %v919_v30, %v2596_v61  ;;  %v921_v40 = vpop.f32.mrb[41].mxu0 }
 0x28c   :  { %1500 = vst [vmem:[#allocation8 + $0xf8] sm:$0xf] %v1670_v11  ;;  %v1672_v17 = vpack.c.bf16 %v1096_v26, %v1096_v26  ;;  %v922_v41 = vadd.f32 %v921_v40, %v2599_v34  ;;  %v923_v0 = vpop.f32.mrb[42].mxu0 }
 0x28d   :  { %1506 = vst [vmem:[#allocation8 + $0x11c] sm:$0xf] %v1676_v36  ;;  %v924_v35 = vadd.f32 %v923_v0, %v2596_v61  ;;  %v925_v2 = vpop.f32.mrb[43].mxu0 }
 0x28e   :  { %1502 = vst [vmem:[#allocation8 + $0x104] sm:$0xf] %v1672_v17  ;;  %v1669_v3 = vpack.c.bf16 %v922_v41, %v920_v24  ;;  %v926_v18 = vadd.f32 %v925_v2, %v2599_v34  ;;  %v1838_v48 = vpop.f32.mrb[40].mxu1 }
 0x28f   :  { %v1117_v25 = vadd.f32 %v1838_v48, %v2637_v55  ;;  %v1108_v39 = vpop.f32.mrb[41].mxu1 }
 0x290   :  { %1499 = vst [vmem:[#allocation8 + $0xf0] sm:$0xff] %v1669_v3  ;;  %v1671_v7 = vpack.c.bf16 %v926_v18, %v924_v35  ;;  %v1109_v33 = vadd.f32 %v1108_v39, %v2637_v55  ;;  %v1839_v43 = vpop.f32.mrb[42].mxu1 }
 0x291   :  { %v1682_v29 = vpack.c.bf16 %v1117_v25, %v1117_v25  ;;  %v1120_v12 = vadd.f32 %v1839_v43, %v2637_v55  ;;  %v1111_v52 = vpop.f32.mrb[43].mxu1 }
 0x292   :  { %1501 = vst [vmem:[#allocation8 + $0xfc] sm:$0xff] %v1671_v7  ;;  %v1678_v49 = vpack.c.bf16 %v1109_v33, %v1109_v33  ;;  %v1112_v1 = vadd.f32 %v1111_v52, %v2637_v55  ;;  %v929_v5 = vpop.f32.mrb[44].mxu0 }
 0x293   :  { %1512 = vst [vmem:[#allocation8 + $0x140] sm:$0xf] %v1682_v29  ;;  %v1684_v50 = vpack.c.bf16 %v1120_v12, %v1120_v12  ;;  %v930_v19 = vadd.f32 %v929_v5, %v2596_v61  ;;  %v931_v42 = vpop.f32.mrb[45].mxu0 }
 0x294   :  { %1508 = vst [vmem:[#allocation8 + $0x128] sm:$0xf] %v1678_v49  ;;  %v1680_v32 = vpack.c.bf16 %v1112_v1, %v1112_v1  ;;  %v932_v51 = vadd.f32 %v931_v42, %v2599_v34  ;;  %v933_v38 = vpop.f32.mrb[46].mxu0 }
 0x295   :  { %1514 = vst [vmem:[#allocation8 + $0x14c] sm:$0xf] %v1684_v50  ;;  %v934_v54 = vadd.f32 %v933_v38, %v2596_v61  ;;  %v935_v10 = vpop.f32.mrb[47].mxu0 }
 0x296   :  { %1510 = vst [vmem:[#allocation8 + $0x134] sm:$0xf] %v1680_v32  ;;  %v1673_v8 = vpack.c.bf16 %v932_v51, %v930_v19  ;;  %v936_v4 = vadd.f32 %v935_v10, %v2599_v34  ;;  %v1842_v13 = vpop.f32.mrb[44].mxu1 }
 0x297   :  { %v1133_v44 = vadd.f32 %v1842_v13, %v2637_v55  ;;  %v1124_v46 = vpop.f32.mrb[45].mxu1 }
 0x298   :  { %1503 = vst [vmem:[#allocation8 + $0x108] sm:$0xff] %v1673_v8  ;;  %v1675_v28 = vpack.c.bf16 %v936_v4, %v934_v54  ;;  %v1125_v23 = vadd.f32 %v1124_v46, %v2637_v55  ;;  %v1843_v21 = vpop.f32.mrb[46].mxu1 }
 0x299   :  { %v1690_v53 = vpack.c.bf16 %v1133_v44, %v1133_v44  ;;  %v1136_v27 = vadd.f32 %v1843_v21, %v2637_v55  ;;  %v1127_v14 = vpop.f32.mrb[47].mxu1 }
 0x29a   :  { %1505 = vst [vmem:[#allocation8 + $0x114] sm:$0xff] %v1675_v28  ;;  %v1686_v61 = vpack.c.bf16 %v1125_v23, %v1125_v23  ;;  %v1128_v6 = vadd.f32 %v1127_v14, %v2637_v55 }
 0x29b   :  { %1520 = vst [vmem:[#allocation8 + $0x170] sm:$0xf] %v1690_v53  ;;  %v1692_v34 = vpack.c.bf16 %v1136_v27, %v1136_v27 }
 0x29c   :  { %1516 = vst [vmem:[#allocation8 + $0x158] sm:$0xf] %v1686_v61  ;;  %v1688_v60 = vpack.c.bf16 %v1128_v6, %v1128_v6 }
 0x29d   :  { %1522 = vst [vmem:[#allocation8 + $0x17c] sm:$0xf] %v1692_v34 }
 0x29e   :  { %1518 = vst [vmem:[#allocation8 + $0x164] sm:$0xf] %v1688_v60 }
 0x29f   :  { %2019 = shalt.err (!%p2016_p6)
}
 0x2a0   :  { %s2020_s27 = scalar_lea.hbm %s2722_s5, 6144 }
 0x2a1   :  { %p2021_p7 = scmp.ne.s32.totalorder %s2722_s5, %s2020_s27  ;;  %p2024_p8 = scmp.lt.u32.totalorder %s2020_s27, %s2722_s5 }
 0x2a3   :  { %p2026_p9 = pnand %p2024_p8, %p2021_p7 }
 0x2a5   :  { %2029 = shalt.err (!%p2026_p9)
}
 0x2a6   :  { %1534 = dma.vmem_to_hbm [thread:$0]  %s1529_s23, 6144, %s2722_s5, [#allocation5], %s2040_s0, %s2040_s0, %s2041_s17  }
 0x2a7   :  { %2034 = dma.done.wait [#allocation5], 6144  }
 0x2a8   :  { %2035 = vsyncadd [#allocation5], 4294961152 }
 0x2a9   :  { %1538 = vsyncpa [#allocation4], 1 }
 0x2aa   :  { %1539 = vsyncpa [#allocation7], 1 }
 0x2ab   :  { %1540 = vsyncpa [#allocation5], 1 }

</bundles_post_ra>
